<compile_context>
chip_gen: v7x
topology: tpu7x:2x2x1
jax: 0.10.0
libtpu: 0.0.40
codegen_flags: <defaults>
</compile_context>

<pallas_src>
import numpy as np
import jax
import jax.numpy as jnp
from jax.experimental import pallas as pl
from jax.experimental.pallas import tpu as pltpu


# ----------------------------- Pallas kernel -------------------------------- #
def simpler_head_kernel(x_ref, w1_ref, b1_ref, w2_ref, b2_ref, wfc_ref, bfc_ref,
                        pool_ref, out_ref):
    # x_ref:    (B, Fp, Tp, d)   bf16 NHWC activations (whole batch, one block)
    # w1_ref:   (9*d,  d2)       bf16 flattened conv1 weight (tap k = ki*3+kj)
    # b1_ref:   (1, d2)          f32
    # w2_ref:   (9*d2, d4)       bf16 flattened conv2 weight
    # b2_ref:   (1, d4)          f32
    # wfc_ref:  (d4, NPAD)       f32, zero-padded beyond n_cls (lane-dense)
    # bfc_ref:  (1, NPAD)        f32
    # pool_ref: (B, M)           f32 constant block-mean matrix (spatial mean)
    # out_ref:  (B, NPAD)        f32 logits (padded; wrapper slices to n_cls)
    B, Fp, Tp, d = x_ref.shape
    d2 = b1_ref.shape[1]
    d4 = b2_ref.shape[1]
    M = B * Fp * Tp

    def conv3x3(v, w_ref, cin, cout):
        # v: (B, Fp, Tp, cin) bf16.  Build ONE zero halo, then accumulate the
        # nine kernel taps as small bf16 matmuls (f32 acc) against static row
        # slices of the flattened OIHW weight: tap k = ki*3+kj owns rows
        # [k*cin, (k+1)*cin).
        zr = jnp.zeros((B, 1, Tp, cin), jnp.bfloat16)
        h = jnp.concatenate([zr, v, zr], axis=1)            # (B, Fp+2, Tp, cin)
        zc = jnp.zeros((B, Fp + 2, 1, cin), jnp.bfloat16)
        h = jnp.concatenate([zc, h, zc], axis=2)            # (B, Fp+2, Tp+2, cin)
        acc = jnp.zeros((M, cout), jnp.float32)
        for ki in range(3):
            for kj in range(3):
                k = ki * 3 + kj
                tap = h[:, ki:ki + Fp, kj:kj + Tp, :].reshape(M, cin)
                acc = acc + jnp.dot(tap, w_ref[k * cin:(k + 1) * cin, :],
                                    preferred_element_type=jnp.float32)
        return acc

    x = x_ref[...]  # bf16 already (cast happened before the kernel)

    # ---- conv1 (3x3, pad=1) + bias + ReLU (bias/ReLU in f32) ----
    y1 = jnp.maximum(conv3x3(x, w1_ref, d, d2) + b1_ref[...], 0.0)    # (M, d2)
    # Dropout(p=0.1) in eval mode is identity.
    y1b = y1.astype(jnp.bfloat16).reshape(B, Fp, Tp, d2)               # single cast

    # ---- conv2 (3x3, pad=1) + bias + ReLU ----
    y2 = jnp.maximum(conv3x3(y1b, w2_ref, d2, d4) + b2_ref[...], 0.0)  # (M, d4)

    # ---- spatial mean per sample on the MXU, then the final Linear ----
    pooled = jnp.dot(pool_ref[...], y2,
                     preferred_element_type=jnp.float32)               # (B, d4)
    out_ref[...] = (jnp.dot(pooled, wfc_ref[...],
                            preferred_element_type=jnp.float32) + bfc_ref[...])


def simpler_head_pallas(emb, Fp, Tp, n_cls, kernel_params):
    """emb: (B, Fp*Tp, d) float32. Returns (B, n_cls) logits."""
    w1, b1, w2, b2, wfc_pad, bfc_pad = kernel_params
    B, _, d = emb.shape
    n_pad = wfc_pad.shape[1]
    assert n_cls <= n_pad, f"n_cls={n_cls} exceeds padded lane width {n_pad}"

    # view(B,Fp,Tp,d).permute(0,3,1,2) is the same data in NHWC -> plain reshape.
    # Cast to bf16 here: the conv inputs are bf16 anyway, so numerics are
    # unchanged and the kernel's HBM read of x is halved.
    x = emb.astype(jnp.bfloat16).reshape(B, Fp, Tp, d)

    # Constant (B, M) block-mean pooling matrix (1/(Fp*Tp) block diagonal).
    S = Fp * Tp
    pool = jnp.asarray(np.kron(np.eye(B, dtype=np.float32),
                               np.full((1, S), 1.0 / S, np.float32)))

    vmem = pl.BlockSpec(memory_space=pltpu.MemorySpace.VMEM)
    out = pl.pallas_call(
        simpler_head_kernel,
        out_shape=jax.ShapeDtypeStruct((B, n_pad), jnp.float32),
        in_specs=[vmem] * 8,
        out_specs=vmem,
    )(x, w1, b1, w2, b2, wfc_pad, bfc_pad, pool)
    return out[:, :n_cls]


# ------------------------- parameter construction --------------------------- #
def make_params(key, d, n_cls, n_pad=128):
    assert n_cls <= n_pad, f"n_cls={n_cls} must be <= n_pad={n_pad}"
    d2, d4 = d // 2, d // 4
    ks = jax.random.split(key, 6)
    # Conv weights generated in PyTorch OIHW layout, then flattened so that
    # tap k = ki*3 + kj occupies rows [k*Cin, (k+1)*Cin).
    w1_oihw = jax.random.normal(ks[0], (d2, d, 3, 3), jnp.float32) * 0.05
    b1 = jax.random.normal(ks[1], (d2,), jnp.float32) * 0.05
    w2_oihw = jax.random.normal(ks[2], (d4, d2, 3, 3), jnp.float32) * 0.05
    b2 = jax.random.normal(ks[3], (d4,), jnp.float32) * 0.05
    wfc = jax.random.normal(ks[4], (d4, n_cls), jnp.float32) * 0.05
    bfc = jax.random.normal(ks[5], (n_cls,), jnp.float32) * 0.05

    w1_flat = jnp.transpose(w1_oihw, (2, 3, 1, 0)).reshape(9 * d, d2)
    w2_flat = jnp.transpose(w2_oihw, (2, 3, 1, 0)).reshape(9 * d2, d4)
    w1_flat = w1_flat.astype(jnp.bfloat16)
    w2_flat = w2_flat.astype(jnp.bfloat16)

    # Lane-dense FC: pad the n_cls outputs to n_pad lanes (sliced in wrapper).
    wfc_pad = jnp.zeros((d4, n_pad), jnp.float32).at[:, :n_cls].set(wfc)
    bfc_pad = jnp.zeros((1, n_pad), jnp.float32).at[:, :n_cls].set(bfc)

    kernel_params = (w1_flat, b1[None, :], w2_flat, b2[None, :],
                     wfc_pad, bfc_pad)
    ref_params = (w1_oihw, b1, w2_oihw, b2, wfc, bfc)
    return kernel_params, ref_params


# ------------------------- encoder stub (plain JAX) ------------------------- #
# TODO(synk): real `load_pretrained_encoder(cfg, enc_ckpt)` is an external
# pretrained checkpoint with no in-script definition; stubbed here as a
# deterministic non-overlapping patch embedding producing (emb, Fp, Tp).
def encoder_stub(spec, w_patch, pf, pt, d):
    B, F, T = spec.shape
    Fp, Tp = F // pf, T // pt
    # spec.unsqueeze(1) -> (B, 1, F, T); single channel folded into the patch.
    patches = spec.reshape(B, Fp, pf, Tp, pt).transpose(0, 1, 3, 2, 4)
    patches = patches.reshape(B, Fp * Tp, pf * pt)
    emb = patches @ w_patch  # (B, Fp*Tp, d)
    return emb, Fp, Tp


# ------------------------------ pure-JAX reference --------------------------- #
def simpler_head_ref(emb, Fp, Tp, ref_params):
    # Matches the kernel's numerics: bf16 conv inputs/weights, f32 accumulation,
    # f32 bias/ReLU/mean/FC.
    w1_oihw, b1, w2_oihw, b2, wfc, bfc = ref_params
    B, _, d = emb.shape
    x = emb.reshape(B, Fp, Tp, d).transpose(0, 3, 1, 2)  # NCHW, like the module
    dn = ("NCHW", "OIHW", "NCHW")
    y = jax.lax.conv_general_dilated(
        x.astype(jnp.bfloat16), w1_oihw.astype(jnp.bfloat16), (1, 1), "SAME",
        dimension_numbers=dn, preferred_element_type=jnp.float32)
    y = jnp.maximum(y + b1[None, :, None, None], 0.0)
    y = jax.lax.conv_general_dilated(
        y.astype(jnp.bfloat16), w2_oihw.astype(jnp.bfloat16), (1, 1), "SAME",
        dimension_numbers=dn, preferred_element_type=jnp.float32)
    y = jnp.maximum(y + b2[None, :, None, None], 0.0)
    pooled = y.mean(axis=(2, 3))
    return pooled @ wfc + bfc


# ----------------------------------- main ------------------------------------ #
if __name__ == "__main__":
    key = jax.random.PRNGKey(0)
    k_spec, k_enc, k_head = jax.random.split(key, 3)

    B, F, T = 2, 32, 32          # spectrogram input (B, F, T)
    pf = pt = 4                  # encoder-stub patch size -> Fp = Tp = 8
    d, n_cls = 32, 5             # cfg.d_model, n_cls

    spec = jax.random.normal(k_spec, (B, F, T), jnp.float32)
    w_patch = jax.random.normal(k_enc, (pf * pt, d), jnp.float32) * 0.1
    kernel_params, ref_params = make_params(k_head, d, n_cls)

    # Net.forward: encoder -> (emb, Fp, Tp) -> SimplerHead
    emb, Fp, Tp = encoder_stub(spec, w_patch, pf, pt, d)
    logits = simpler_head_pallas(emb, Fp, Tp, n_cls, kernel_params)
    logits = jax.block_until_ready(logits)

    ref = simpler_head_ref(emb, Fp, Tp, ref_params)
    assert logits.shape == (B, n_cls)
    max_err = jnp.max(jnp.abs(logits - ref))
    assert jnp.allclose(logits, ref, atol=1e-3, rtol=1e-3), (
        f"max abs diff {max_err}")

    print("KERNEL_OK")
</pallas_src>

<mosaic_0001>
module attributes {stable_mosaic.version = 11 : i64} {
  func.func @simpler_head_kernel(%arg0: memref<2x8x8x32xbf16, #tpu.memory_space<vmem>>, %arg1: memref<288x16xbf16, #tpu.memory_space<vmem>>, %arg2: memref<1x16xf32, #tpu.memory_space<vmem>>, %arg3: memref<144x8xbf16, #tpu.memory_space<vmem>>, %arg4: memref<1x8xf32, #tpu.memory_space<vmem>>, %arg5: memref<8x128xf32, #tpu.memory_space<vmem>>, %arg6: memref<1x128xf32, #tpu.memory_space<vmem>>, %arg7: memref<2x128xf32, #tpu.memory_space<vmem>>, %arg8: memref<2x128xf32, #tpu.memory_space<vmem>>) attributes {dimension_semantics = [], scalar_prefetch = 0 : i64, scratch_operands = 0 : i64, tpu.core_type = #tpu.core_type<tc>} {
    %c0 = arith.constant 0 : index
    %c0_0 = arith.constant 0 : index
    %c0_1 = arith.constant 0 : index
    %c0_2 = arith.constant 0 : index
    %0 = vector.load %arg0[%c0, %c0_0, %c0_1, %c0_2] : memref<2x8x8x32xbf16, #tpu.memory_space<vmem>>, vector<2x8x8x32xbf16>
    %cst = arith.constant 0.000000e+00 : bf16
    %1 = vector.broadcast %cst : bf16 to vector<2x1x8x32xbf16>
    %2 = tpu.concatenate %1, %0, %1 in 1 : vector<2x1x8x32xbf16>, vector<2x8x8x32xbf16>, vector<2x1x8x32xbf16> -> vector<2x10x8x32xbf16>
    %cst_3 = arith.constant 0.000000e+00 : bf16
    %3 = vector.broadcast %cst_3 : bf16 to vector<2x10x1x32xbf16>
    %4 = tpu.concatenate %3, %2, %3 in 2 : vector<2x10x1x32xbf16>, vector<2x10x8x32xbf16>, vector<2x10x1x32xbf16> -> vector<2x10x10x32xbf16>
    %cst_4 = arith.constant 0.000000e+00 : f32
    %5 = vector.broadcast %cst_4 : f32 to vector<128x16xf32>
    %6 = vector.extract_strided_slice %4 {offsets = [0, 0, 0, 0], sizes = [2, 8, 8, 32], strides = [1, 1, 1, 1]} : vector<2x10x10x32xbf16> to vector<2x8x8x32xbf16>
    %7 = vector.shape_cast %6 : vector<2x8x8x32xbf16> to vector<128x32xbf16>
    %c0_5 = arith.constant 0 : index
    %c0_6 = arith.constant 0 : index
    %8 = vector.load %arg1[%c0_5, %c0_6] : memref<288x16xbf16, #tpu.memory_space<vmem>>, vector<32x16xbf16>
    %cst_7 = arith.constant dense<0.000000e+00> : vector<128x16xf32>
    %9 = tpu.matmul %7, %8, %cst_7 {dimension_numbers = #tpu.dot_dimension_numbers<[1], [0], [0], [1], [0, 0, 1, 1], [], []>} : vector<128x32xbf16>, vector<32x16xbf16>, vector<128x16xf32> -> vector<128x16xf32>
    %10 = arith.addf %5, %9 : vector<128x16xf32>
    %11 = vector.extract_strided_slice %4 {offsets = [0, 0, 1, 0], sizes = [2, 8, 8, 32], strides = [1, 1, 1, 1]} : vector<2x10x10x32xbf16> to vector<2x8x8x32xbf16>
    %12 = vector.shape_cast %11 : vector<2x8x8x32xbf16> to vector<128x32xbf16>
    %c32 = arith.constant 32 : index
    %c0_8 = arith.constant 0 : index
    %13 = vector.load %arg1[%c32, %c0_8] : memref<288x16xbf16, #tpu.memory_space<vmem>>, vector<32x16xbf16>
    %cst_9 = arith.constant dense<0.000000e+00> : vector<128x16xf32>
    %14 = tpu.matmul %12, %13, %cst_9 {dimension_numbers = #tpu.dot_dimension_numbers<[1], [0], [0], [1], [0, 0, 1, 1], [], []>} : vector<128x32xbf16>, vector<32x16xbf16>, vector<128x16xf32> -> vector<128x16xf32>
    %15 = arith.addf %10, %14 : vector<128x16xf32>
    %16 = vector.extract_strided_slice %4 {offsets = [0, 0, 2, 0], sizes = [2, 8, 8, 32], strides = [1, 1, 1, 1]} : vector<2x10x10x32xbf16> to vector<2x8x8x32xbf16>
    %17 = vector.shape_cast %16 : vector<2x8x8x32xbf16> to vector<128x32xbf16>
    %c64 = arith.constant 64 : index
    %c0_10 = arith.constant 0 : index
    %18 = vector.load %arg1[%c64, %c0_10] : memref<288x16xbf16, #tpu.memory_space<vmem>>, vector<32x16xbf16>
    %cst_11 = arith.constant dense<0.000000e+00> : vector<128x16xf32>
    %19 = tpu.matmul %17, %18, %cst_11 {dimension_numbers = #tpu.dot_dimension_numbers<[1], [0], [0], [1], [0, 0, 1, 1], [], []>} : vector<128x32xbf16>, vector<32x16xbf16>, vector<128x16xf32> -> vector<128x16xf32>
    %20 = arith.addf %15, %19 : vector<128x16xf32>
    %21 = vector.extract_strided_slice %4 {offsets = [0, 1, 0, 0], sizes = [2, 8, 8, 32], strides = [1, 1, 1, 1]} : vector<2x10x10x32xbf16> to vector<2x8x8x32xbf16>
    %22 = vector.shape_cast %21 : vector<2x8x8x32xbf16> to vector<128x32xbf16>
    %c96 = arith.constant 96 : index
    %c0_12 = arith.constant 0 : index
    %23 = vector.load %arg1[%c96, %c0_12] : memref<288x16xbf16, #tpu.memory_space<vmem>>, vector<32x16xbf16>
    %cst_13 = arith.constant dense<0.000000e+00> : vector<128x16xf32>
    %24 = tpu.matmul %22, %23, %cst_13 {dimension_numbers = #tpu.dot_dimension_numbers<[1], [0], [0], [1], [0, 0, 1, 1], [], []>} : vector<128x32xbf16>, vector<32x16xbf16>, vector<128x16xf32> -> vector<128x16xf32>
    %25 = arith.addf %20, %24 : vector<128x16xf32>
    %26 = vector.extract_strided_slice %4 {offsets = [0, 1, 1, 0], sizes = [2, 8, 8, 32], strides = [1, 1, 1, 1]} : vector<2x10x10x32xbf16> to vector<2x8x8x32xbf16>
    %27 = vector.shape_cast %26 : vector<2x8x8x32xbf16> to vector<128x32xbf16>
    %c128 = arith.constant 128 : index
    %c0_14 = arith.constant 0 : index
    %28 = vector.load %arg1[%c128, %c0_14] : memref<288x16xbf16, #tpu.memory_space<vmem>>, vector<32x16xbf16>
    %cst_15 = arith.constant dense<0.000000e+00> : vector<128x16xf32>
    %29 = tpu.matmul %27, %28, %cst_15 {dimension_numbers = #tpu.dot_dimension_numbers<[1], [0], [0], [1], [0, 0, 1, 1], [], []>} : vector<128x32xbf16>, vector<32x16xbf16>, vector<128x16xf32> -> vector<128x16xf32>
    %30 = arith.addf %25, %29 : vector<128x16xf32>
    %31 = vector.extract_strided_slice %4 {offsets = [0, 1, 2, 0], sizes = [2, 8, 8, 32], strides = [1, 1, 1, 1]} : vector<2x10x10x32xbf16> to vector<2x8x8x32xbf16>
    %32 = vector.shape_cast %31 : vector<2x8x8x32xbf16> to vector<128x32xbf16>
    %c160 = arith.constant 160 : index
    %c0_16 = arith.constant 0 : index
    %33 = vector.load %arg1[%c160, %c0_16] : memref<288x16xbf16, #tpu.memory_space<vmem>>, vector<32x16xbf16>
    %cst_17 = arith.constant dense<0.000000e+00> : vector<128x16xf32>
    %34 = tpu.matmul %32, %33, %cst_17 {dimension_numbers = #tpu.dot_dimension_numbers<[1], [0], [0], [1], [0, 0, 1, 1], [], []>} : vector<128x32xbf16>, vector<32x16xbf16>, vector<128x16xf32> -> vector<128x16xf32>
    %35 = arith.addf %30, %34 : vector<128x16xf32>
    %36 = vector.extract_strided_slice %4 {offsets = [0, 2, 0, 0], sizes = [2, 8, 8, 32], strides = [1, 1, 1, 1]} : vector<2x10x10x32xbf16> to vector<2x8x8x32xbf16>
    %37 = vector.shape_cast %36 : vector<2x8x8x32xbf16> to vector<128x32xbf16>
    %c192 = arith.constant 192 : index
    %c0_18 = arith.constant 0 : index
    %38 = vector.load %arg1[%c192, %c0_18] : memref<288x16xbf16, #tpu.memory_space<vmem>>, vector<32x16xbf16>
    %cst_19 = arith.constant dense<0.000000e+00> : vector<128x16xf32>
    %39 = tpu.matmul %37, %38, %cst_19 {dimension_numbers = #tpu.dot_dimension_numbers<[1], [0], [0], [1], [0, 0, 1, 1], [], []>} : vector<128x32xbf16>, vector<32x16xbf16>, vector<128x16xf32> -> vector<128x16xf32>
    %40 = arith.addf %35, %39 : vector<128x16xf32>
    %41 = vector.extract_strided_slice %4 {offsets = [0, 2, 1, 0], sizes = [2, 8, 8, 32], strides = [1, 1, 1, 1]} : vector<2x10x10x32xbf16> to vector<2x8x8x32xbf16>
    %42 = vector.shape_cast %41 : vector<2x8x8x32xbf16> to vector<128x32xbf16>
    %c224 = arith.constant 224 : index
    %c0_20 = arith.constant 0 : index
    %43 = vector.load %arg1[%c224, %c0_20] : memref<288x16xbf16, #tpu.memory_space<vmem>>, vector<32x16xbf16>
    %cst_21 = arith.constant dense<0.000000e+00> : vector<128x16xf32>
    %44 = tpu.matmul %42, %43, %cst_21 {dimension_numbers = #tpu.dot_dimension_numbers<[1], [0], [0], [1], [0, 0, 1, 1], [], []>} : vector<128x32xbf16>, vector<32x16xbf16>, vector<128x16xf32> -> vector<128x16xf32>
    %45 = arith.addf %40, %44 : vector<128x16xf32>
    %46 = vector.extract_strided_slice %4 {offsets = [0, 2, 2, 0], sizes = [2, 8, 8, 32], strides = [1, 1, 1, 1]} : vector<2x10x10x32xbf16> to vector<2x8x8x32xbf16>
    %47 = vector.shape_cast %46 : vector<2x8x8x32xbf16> to vector<128x32xbf16>
    %c256 = arith.constant 256 : index
    %c0_22 = arith.constant 0 : index
    %48 = vector.load %arg1[%c256, %c0_22] : memref<288x16xbf16, #tpu.memory_space<vmem>>, vector<32x16xbf16>
    %cst_23 = arith.constant dense<0.000000e+00> : vector<128x16xf32>
    %49 = tpu.matmul %47, %48, %cst_23 {dimension_numbers = #tpu.dot_dimension_numbers<[1], [0], [0], [1], [0, 0, 1, 1], [], []>} : vector<128x32xbf16>, vector<32x16xbf16>, vector<128x16xf32> -> vector<128x16xf32>
    %50 = arith.addf %45, %49 : vector<128x16xf32>
    %c0_24 = arith.constant 0 : index
    %c0_25 = arith.constant 0 : index
    %51 = vector.load %arg2[%c0_24, %c0_25] : memref<1x16xf32, #tpu.memory_space<vmem>>, vector<1x16xf32>
    %52 = vector.broadcast %51 : vector<1x16xf32> to vector<128x16xf32>
    %53 = arith.addf %50, %52 : vector<128x16xf32>
    %cst_26 = arith.constant 0.000000e+00 : f32
    %54 = vector.broadcast %cst_26 : f32 to vector<128x16xf32>
    %55 = arith.maximumf %53, %54 : vector<128x16xf32>
    %56 = arith.truncf %55 : vector<128x16xf32> to vector<128x16xbf16>
    %57 = vector.shape_cast %56 : vector<128x16xbf16> to vector<2x8x8x16xbf16>
    %cst_27 = arith.constant 0.000000e+00 : bf16
    %58 = vector.broadcast %cst_27 : bf16 to vector<2x1x8x16xbf16>
    %59 = tpu.concatenate %58, %57, %58 in 1 : vector<2x1x8x16xbf16>, vector<2x8x8x16xbf16>, vector<2x1x8x16xbf16> -> vector<2x10x8x16xbf16>
    %cst_28 = arith.constant 0.000000e+00 : bf16
    %60 = vector.broadcast %cst_28 : bf16 to vector<2x10x1x16xbf16>
    %61 = tpu.concatenate %60, %59, %60 in 2 : vector<2x10x1x16xbf16>, vector<2x10x8x16xbf16>, vector<2x10x1x16xbf16> -> vector<2x10x10x16xbf16>
    %cst_29 = arith.constant 0.000000e+00 : f32
    %62 = vector.broadcast %cst_29 : f32 to vector<128x8xf32>
    %63 = vector.extract_strided_slice %61 {offsets = [0, 0, 0, 0], sizes = [2, 8, 8, 16], strides = [1, 1, 1, 1]} : vector<2x10x10x16xbf16> to vector<2x8x8x16xbf16>
    %64 = vector.shape_cast %63 : vector<2x8x8x16xbf16> to vector<128x16xbf16>
    %c0_30 = arith.constant 0 : index
    %c0_31 = arith.constant 0 : index
    %65 = vector.load %arg3[%c0_30, %c0_31] : memref<144x8xbf16, #tpu.memory_space<vmem>>, vector<16x8xbf16>
    %cst_32 = arith.constant dense<0.000000e+00> : vector<128x8xf32>
    %66 = tpu.matmul %64, %65, %cst_32 {dimension_numbers = #tpu.dot_dimension_numbers<[1], [0], [0], [1], [0, 0, 1, 1], [], []>} : vector<128x16xbf16>, vector<16x8xbf16>, vector<128x8xf32> -> vector<128x8xf32>
    %67 = arith.addf %62, %66 : vector<128x8xf32>
    %68 = vector.extract_strided_slice %61 {offsets = [0, 0, 1, 0], sizes = [2, 8, 8, 16], strides = [1, 1, 1, 1]} : vector<2x10x10x16xbf16> to vector<2x8x8x16xbf16>
    %69 = vector.shape_cast %68 : vector<2x8x8x16xbf16> to vector<128x16xbf16>
    %c16 = arith.constant 16 : index
    %c0_33 = arith.constant 0 : index
    %70 = vector.load %arg3[%c16, %c0_33] : memref<144x8xbf16, #tpu.memory_space<vmem>>, vector<16x8xbf16>
    %cst_34 = arith.constant dense<0.000000e+00> : vector<128x8xf32>
    %71 = tpu.matmul %69, %70, %cst_34 {dimension_numbers = #tpu.dot_dimension_numbers<[1], [0], [0], [1], [0, 0, 1, 1], [], []>} : vector<128x16xbf16>, vector<16x8xbf16>, vector<128x8xf32> -> vector<128x8xf32>
    %72 = arith.addf %67, %71 : vector<128x8xf32>
    %73 = vector.extract_strided_slice %61 {offsets = [0, 0, 2, 0], sizes = [2, 8, 8, 16], strides = [1, 1, 1, 1]} : vector<2x10x10x16xbf16> to vector<2x8x8x16xbf16>
    %74 = vector.shape_cast %73 : vector<2x8x8x16xbf16> to vector<128x16xbf16>
    %c32_35 = arith.constant 32 : index
    %c0_36 = arith.constant 0 : index
    %75 = vector.load %arg3[%c32_35, %c0_36] : memref<144x8xbf16, #tpu.memory_space<vmem>>, vector<16x8xbf16>
    %cst_37 = arith.constant dense<0.000000e+00> : vector<128x8xf32>
    %76 = tpu.matmul %74, %75, %cst_37 {dimension_numbers = #tpu.dot_dimension_numbers<[1], [0], [0], [1], [0, 0, 1, 1], [], []>} : vector<128x16xbf16>, vector<16x8xbf16>, vector<128x8xf32> -> vector<128x8xf32>
    %77 = arith.addf %72, %76 : vector<128x8xf32>
    %78 = vector.extract_strided_slice %61 {offsets = [0, 1, 0, 0], sizes = [2, 8, 8, 16], strides = [1, 1, 1, 1]} : vector<2x10x10x16xbf16> to vector<2x8x8x16xbf16>
    %79 = vector.shape_cast %78 : vector<2x8x8x16xbf16> to vector<128x16xbf16>
    %c48 = arith.constant 48 : index
    %c0_38 = arith.constant 0 : index
    %80 = vector.load %arg3[%c48, %c0_38] : memref<144x8xbf16, #tpu.memory_space<vmem>>, vector<16x8xbf16>
    %cst_39 = arith.constant dense<0.000000e+00> : vector<128x8xf32>
    %81 = tpu.matmul %79, %80, %cst_39 {dimension_numbers = #tpu.dot_dimension_numbers<[1], [0], [0], [1], [0, 0, 1, 1], [], []>} : vector<128x16xbf16>, vector<16x8xbf16>, vector<128x8xf32> -> vector<128x8xf32>
    %82 = arith.addf %77, %81 : vector<128x8xf32>
    %83 = vector.extract_strided_slice %61 {offsets = [0, 1, 1, 0], sizes = [2, 8, 8, 16], strides = [1, 1, 1, 1]} : vector<2x10x10x16xbf16> to vector<2x8x8x16xbf16>
    %84 = vector.shape_cast %83 : vector<2x8x8x16xbf16> to vector<128x16xbf16>
    %c64_40 = arith.constant 64 : index
    %c0_41 = arith.constant 0 : index
    %85 = vector.load %arg3[%c64_40, %c0_41] : memref<144x8xbf16, #tpu.memory_space<vmem>>, vector<16x8xbf16>
    %cst_42 = arith.constant dense<0.000000e+00> : vector<128x8xf32>
    %86 = tpu.matmul %84, %85, %cst_42 {dimension_numbers = #tpu.dot_dimension_numbers<[1], [0], [0], [1], [0, 0, 1, 1], [], []>} : vector<128x16xbf16>, vector<16x8xbf16>, vector<128x8xf32> -> vector<128x8xf32>
    %87 = arith.addf %82, %86 : vector<128x8xf32>
    %88 = vector.extract_strided_slice %61 {offsets = [0, 1, 2, 0], sizes = [2, 8, 8, 16], strides = [1, 1, 1, 1]} : vector<2x10x10x16xbf16> to vector<2x8x8x16xbf16>
    %89 = vector.shape_cast %88 : vector<2x8x8x16xbf16> to vector<128x16xbf16>
    %c80 = arith.constant 80 : index
    %c0_43 = arith.constant 0 : index
    %90 = vector.load %arg3[%c80, %c0_43] : memref<144x8xbf16, #tpu.memory_space<vmem>>, vector<16x8xbf16>
    %cst_44 = arith.constant dense<0.000000e+00> : vector<128x8xf32>
    %91 = tpu.matmul %89, %90, %cst_44 {dimension_numbers = #tpu.dot_dimension_numbers<[1], [0], [0], [1], [0, 0, 1, 1], [], []>} : vector<128x16xbf16>, vector<16x8xbf16>, vector<128x8xf32> -> vector<128x8xf32>
    %92 = arith.addf %87, %91 : vector<128x8xf32>
    %93 = vector.extract_strided_slice %61 {offsets = [0, 2, 0, 0], sizes = [2, 8, 8, 16], strides = [1, 1, 1, 1]} : vector<2x10x10x16xbf16> to vector<2x8x8x16xbf16>
    %94 = vector.shape_cast %93 : vector<2x8x8x16xbf16> to vector<128x16xbf16>
    %c96_45 = arith.constant 96 : index
    %c0_46 = arith.constant 0 : index
    %95 = vector.load %arg3[%c96_45, %c0_46] : memref<144x8xbf16, #tpu.memory_space<vmem>>, vector<16x8xbf16>
    %cst_47 = arith.constant dense<0.000000e+00> : vector<128x8xf32>
    %96 = tpu.matmul %94, %95, %cst_47 {dimension_numbers = #tpu.dot_dimension_numbers<[1], [0], [0], [1], [0, 0, 1, 1], [], []>} : vector<128x16xbf16>, vector<16x8xbf16>, vector<128x8xf32> -> vector<128x8xf32>
    %97 = arith.addf %92, %96 : vector<128x8xf32>
    %98 = vector.extract_strided_slice %61 {offsets = [0, 2, 1, 0], sizes = [2, 8, 8, 16], strides = [1, 1, 1, 1]} : vector<2x10x10x16xbf16> to vector<2x8x8x16xbf16>
    %99 = vector.shape_cast %98 : vector<2x8x8x16xbf16> to vector<128x16xbf16>
    %c112 = arith.constant 112 : index
    %c0_48 = arith.constant 0 : index
    %100 = vector.load %arg3[%c112, %c0_48] : memref<144x8xbf16, #tpu.memory_space<vmem>>, vector<16x8xbf16>
    %cst_49 = arith.constant dense<0.000000e+00> : vector<128x8xf32>
    %101 = tpu.matmul %99, %100, %cst_49 {dimension_numbers = #tpu.dot_dimension_numbers<[1], [0], [0], [1], [0, 0, 1, 1], [], []>} : vector<128x16xbf16>, vector<16x8xbf16>, vector<128x8xf32> -> vector<128x8xf32>
    %102 = arith.addf %97, %101 : vector<128x8xf32>
    %103 = vector.extract_strided_slice %61 {offsets = [0, 2, 2, 0], sizes = [2, 8, 8, 16], strides = [1, 1, 1, 1]} : vector<2x10x10x16xbf16> to vector<2x8x8x16xbf16>
    %104 = vector.shape_cast %103 : vector<2x8x8x16xbf16> to vector<128x16xbf16>
    %c128_50 = arith.constant 128 : index
    %c0_51 = arith.constant 0 : index
    %105 = vector.load %arg3[%c128_50, %c0_51] : memref<144x8xbf16, #tpu.memory_space<vmem>>, vector<16x8xbf16>
    %cst_52 = arith.constant dense<0.000000e+00> : vector<128x8xf32>
    %106 = tpu.matmul %104, %105, %cst_52 {dimension_numbers = #tpu.dot_dimension_numbers<[1], [0], [0], [1], [0, 0, 1, 1], [], []>} : vector<128x16xbf16>, vector<16x8xbf16>, vector<128x8xf32> -> vector<128x8xf32>
    %107 = arith.addf %102, %106 : vector<128x8xf32>
    %c0_53 = arith.constant 0 : index
    %c0_54 = arith.constant 0 : index
    %108 = vector.load %arg4[%c0_53, %c0_54] : memref<1x8xf32, #tpu.memory_space<vmem>>, vector<1x8xf32>
    %109 = vector.broadcast %108 : vector<1x8xf32> to vector<128x8xf32>
    %110 = arith.addf %107, %109 : vector<128x8xf32>
    %cst_55 = arith.constant 0.000000e+00 : f32
    %111 = vector.broadcast %cst_55 : f32 to vector<128x8xf32>
    %112 = arith.maximumf %110, %111 : vector<128x8xf32>
    %c0_56 = arith.constant 0 : index
    %c0_57 = arith.constant 0 : index
    %113 = vector.load %arg7[%c0_56, %c0_57] : memref<2x128xf32, #tpu.memory_space<vmem>>, vector<2x128xf32>
    %cst_58 = arith.constant dense<0.000000e+00> : vector<2x8xf32>
    %114 = tpu.matmul %113, %112, %cst_58 {dimension_numbers = #tpu.dot_dimension_numbers<[1], [0], [0], [1], [0, 0, 1, 1], [], []>} : vector<2x128xf32>, vector<128x8xf32>, vector<2x8xf32> -> vector<2x8xf32>
    %c0_59 = arith.constant 0 : index
    %c0_60 = arith.constant 0 : index
    %115 = vector.load %arg5[%c0_59, %c0_60] : memref<8x128xf32, #tpu.memory_space<vmem>>, vector<8x128xf32>
    %cst_61 = arith.constant dense<0.000000e+00> : vector<2x128xf32>
    %116 = tpu.matmul %114, %115, %cst_61 {dimension_numbers = #tpu.dot_dimension_numbers<[1], [0], [0], [1], [0, 0, 1, 1], [], []>} : vector<2x8xf32>, vector<8x128xf32>, vector<2x128xf32> -> vector<2x128xf32>
    %c0_62 = arith.constant 0 : index
    %c0_63 = arith.constant 0 : index
    %117 = vector.load %arg6[%c0_62, %c0_63] : memref<1x128xf32, #tpu.memory_space<vmem>>, vector<1x128xf32>
    %118 = vector.broadcast %117 : vector<1x128xf32> to vector<2x128xf32>
    %119 = arith.addf %116, %118 : vector<2x128xf32>
    %c0_64 = arith.constant 0 : index
    %c0_65 = arith.constant 0 : index
    %120 = vector.load %arg8[%c0_64, %c0_65] : memref<2x128xf32, #tpu.memory_space<vmem>>, vector<2x128xf32>
    tpu.vector_store %arg8[%c0_64, %c0_65], %119 {strides = array<i32>} : memref<2x128xf32, #tpu.memory_space<vmem>>, vector<2x128xf32>,
    return
  }
}

</mosaic_0001>

<bundles_post_ra>
// kernel: tpu_custom_call.1
= control target key start
LH: loop header
LB: loop body
LE: loop exit
PB: predicated region body
PF: predicated region fallthrough
CT: control target
= control target key end

     0   :  { %v5450_v2 = vmov 0   ;;  %vm183_vm0 = vcmask 1040384   ;;  %vm184_vm1 = vsmask.f32 256  ;;  %v7234_v21 = vmov 0  ;;  %s7155_s0 = inlined_call_operand.vmem [shape: bf16[2,8,8,32], index: 0, kind: input, shape index: {}]   ;;  %s7156_s1 = inlined_call_operand.vmem [shape: bf16[288,16], index: 1, kind: input, shape index: {}]   ;;  %s7157_s2 = inlined_call_operand.vmem [shape: f32[1,16], index: 2, kind: input, shape index: {}]   ;;  %s7158_s3 = inlined_call_operand.vmem [shape: bf16[144,8], index: 3, kind: input, shape index: {}]   ;;  %s7159_s4 = inlined_call_operand.vmem [shape: f32[1,8], index: 4, kind: input, shape index: {}]   ;;  %s7160_s5 = inlined_call_operand.vmem [shape: f32[8,128], index: 5, kind: input, shape index: {}]   ;;  %s7161_s6 = inlined_call_operand.vmem [shape: f32[1,128], index: 6, kind: input, shape index: {}]   ;;  %s7162_s7 = inlined_call_operand.vmem [shape: f32[2,128], index: 7, kind: input, shape index: {}]   ;;  %s7163_s8 = inlined_call_operand.hbm [shape: f32[2,128], index: 8, kind: output, shape index: {}]  }
   0x1   :  { %v5399_v0 = vld [vmem:[%s7156_s1 + $0x10] sm:$0xff]   ;;  %v5400_v1 = vld [vmem:[%s7156_s1 + $0x18] sm:$0xff]   ;;  %v50_v3 = vrot.slane %v5450_v2, 7  ;;  %v31_v4 = vld [vmem:[%s7155_s0] sm:$0xf]  ;;  %vm203_vm3 = vcmask 1044480  }
   0x2   :  { %4732 = vmatprep.subr.bf16.mxu0 %v5399_v0  ;;  %v32_v5 = vld [vmem:[%s7155_s0 + $0x4] sm:$0xf]  ;;  %v33_v6 = vld [vmem:[%s7155_s0 + $0x8] sm:$0xf]  ;;  %v34_v7 = vld [vmem:[%s7155_s0 + $0xc] sm:$0xf] }
   0x3   :  { %4733 = vmatpush3.bf16.msra.mxu0 %v5399_v0  ;;  %v55_v8 = vshrl.u32 %v31_v4, 16  ;;  %v58_v9 = vshll.u32 %v31_v4, 16  ;;  %v62_v10 = vshrl.u32 %v32_v5, 16  ;;  %v65_v11 = vshll.u32 %v32_v5, 16  ;;  %v5521_v18 = vld [vmem:[%s7156_s1] sm:$0xff]   ;;  %vm5523_vm2 = vmand %vm183_vm0, %vm184_vm1 }
   0x4   :  { %4734 = vmatprep.subr.bf16.mxu0 %v5400_v1  ;;  %v69_v12 = vshrl.u32 %v33_v6, 16  ;;  %v72_v13 = vshll.u32 %v33_v6, 16  ;;  %v76_v14 = vshrl.u32 %v34_v7, 16  ;;  %v79_v15 = vshll.u32 %v34_v7, 16 }
   0x5   :  { %v57_v16 = vrot.slane %v55_v8, 7  ;;  %v64_v17 = vrot.slane %v62_v10, 7  ;;  %v7235_v21 = vsel %vm5523_vm2, 4294967295, %v7234_v21  ;;  %vm204_vm4 = vsmask.f32 4352 }
   0x6   :  { %v71_v19 = vrot.slane %v69_v12, 7  ;;  %v78_v20 = vrot.slane %v76_v14, 7  ;;  %7236 = vst [vmem:[#allocation5_spill] sm:$0xff] %v7235_v21  ;;  %v186_v24 = vsel %vm5523_vm2, 0, %v50_v3  ;;  %vm5529_vm5 = vmand %vm203_vm3, %vm204_vm4  ;;  %v7237_v25 = vmov 0 }
   0x7   :  { %4735 = vmatpush3.bf16.msra.mxu0 %v5400_v1  ;;  %v60_v22 = vor.u32 %v58_v9, %v57_v16  ;;  %v67_v23 = vor.u32 %v65_v11, %v64_v17  ;;  %v7238_v25 = vsel %vm5529_vm5, 4294967295, %v7237_v25  ;;  %vm302_vm6 = vsmask.f32 3328 }
   0x8   :  { %7239 = vst [vmem:[#allocation6_spill] sm:$0xff] %v7238_v25  ;;  %v74_v26 = vor.u32 %v72_v13, %v71_v19  ;;  %v81_v27 = vor.u32 %v79_v15, %v78_v20  ;;  %v5535_v28 = vsel %vm5529_vm5, %v186_v24, 0  ;;  %vm303_vm7 = vsmask.f32 7440  ;;  %4752 = vmatprep.subr.bf16.mxu0 %v5521_v18  ;;  %v35_v19 = vld [vmem:[%s7155_s0 + $0x10] sm:$0xf] }
   0x9   :  { %v187_v29 = vsel %vm5523_vm2, 0, %v60_v22  ;;  %v188_v30 = vsel %vm5523_vm2, 0, %v67_v23  ;;  %v5544_v31 = vcombine.low %v5535_v28, %v5535_v28  ;;  %v5548_v32 = vcombine.high %v5535_v28, %v5535_v28  ;;  %vm5613_vm8 = vmor %vm302_vm6, %vm303_vm7 }
   0xa   :  { %v189_v33 = vsel %vm5523_vm2, 0, %v74_v26  ;;  %v190_v34 = vsel %vm5523_vm2, 0, %v81_v27  ;;  %v5556_v35 = vsel %vm5529_vm5, %v187_v29, 0  ;;  %v5560_v36 = vsel %vm5529_vm5, %v188_v30, 0  ;;  %v36_v27 = vld [vmem:[%s7155_s0 + $0x14] sm:$0xf] }
   0xb   :  { %v5564_v37 = vsel %vm5529_vm5, %v189_v33, 0  ;;  %v5568_v38 = vsel %vm5529_vm5, %v190_v34, 0  ;;  %v5572_v39 = vcombine.low %v5556_v35, %v5556_v35  ;;  %v5576_v40 = vcombine.high %v5556_v35, %v5556_v35  ;;  %v37_v33 = vld [vmem:[%s7155_s0 + $0x18] sm:$0xf]  ;;  %v39_v34 = vld [vmem:[%s7155_s0 + $0x20] sm:$0xf] }
   0xc   :  { %v5580_v41 = vcombine.low %v5560_v36, %v5560_v36  ;;  %v5584_v42 = vcombine.high %v5560_v36, %v5560_v36  ;;  %v5588_v43 = vcombine.low %v5564_v37, %v5564_v37  ;;  %v5592_v44 = vcombine.high %v5564_v37, %v5564_v37 }
   0xd   :  { %v5596_v45 = vcombine.low %v5568_v38, %v5568_v38  ;;  %v5600_v46 = vcombine.high %v5568_v38, %v5568_v38  ;;  %v306_v47 = vshrl.u32 %v5544_v31, 16  ;;  %v309_v48 = vshll.u32 %v5544_v31, 16 }
   0xe   :  { %v315_v49 = vshll.u32 %v5548_v32, 16  ;;  %v320_v50 = vshrl.u32 %v5572_v39, 16  ;;  %v323_v51 = vshll.u32 %v5572_v39, 16  ;;  %v329_v52 = vshll.u32 %v5576_v40, 16 }
   0xf   :  { %v308_v53 = vrot.slane %v306_v47, 4  ;;  %v311_v54 = vrot.slane %v309_v48, 5  ;;  %v334_v55 = vshrl.u32 %v5580_v41, 16  ;;  %v337_v56 = vshll.u32 %v5580_v41, 16 }
  0x10   :  { %v317_v57 = vrot.slane %v315_v49, 5  ;;  %v322_v58 = vrot.slane %v320_v50, 4  ;;  %v325_v59 = vrot.slane %v323_v51, 5  ;;  %v331_v60 = vrot.slane %v329_v52, 5 }
  0x11   :  { %v312_v61 = vor.u32 %v311_v54, %v308_v53  ;;  %v336_v62 = vrot.slane %v334_v55, 4  ;;  %v339_v63 = vrot.slane %v337_v56, 5  ;;  %v343_v0 = vshll.u32 %v5584_v42, 16  ;;  %v40_v55 = vld [vmem:[%s7155_s0 + $0x24] sm:$0xf] }
  0x12   :  { %v326_v2 = vor.u32 %v325_v59, %v322_v58  ;;  %v348_v3 = vshrl.u32 %v5588_v43, 16  ;;  %v351_v4 = vshll.u32 %v5588_v43, 16  ;;  %v357_v5 = vshll.u32 %v5592_v44, 16  ;;  %v5668_v56 = vld [vmem:[%s7155_s0 + $0x28] sm:$0xf] }
  0x13   :  { %v313_v6 = vrot.slane %v312_v61, 4  ;;  %v340_v7 = vor.u32 %v339_v63, %v336_v62  ;;  %v345_v8 = vrot.slane %v343_v0, 5  ;;  %v362_v9 = vshrl.u32 %v5596_v45, 16 }
  0x14   :  { %v327_v10 = vrot.slane %v326_v2, 4  ;;  %v350_v11 = vrot.slane %v348_v3, 4  ;;  %v353_v12 = vrot.slane %v351_v4, 5  ;;  %v359_v13 = vrot.slane %v357_v5, 5  ;;  %v5690_v5 = vld [vmem:[%s7156_s1 + $0x20] sm:$0xff]  }
  0x15   :  { %v5623_v14 = vsel %vm5613_vm8, %v313_v6, %v317_v57  ;;  %v341_v15 = vrot.slane %v340_v7, 4  ;;  %v364_v16 = vrot.slane %v362_v9, 4  ;;  %v365_v17 = vshll.u32 %v5596_v45, 16  ;;  %7250 = vst [vmem:[#allocation13_spill] sm:$0xff] %v5690_v5 }
  0x16   :  { %7242 = vst [vmem:[#allocation7_spill] sm:$0xff] %v5623_v14  ;;  %v5631_v20 = vsel %vm5613_vm8, %v327_v10, %v331_v60  ;;  %v354_v22 = vor.u32 %v353_v12, %v350_v11  ;;  %v371_v23 = vshll.u32 %v5600_v46, 16  ;;  %vm554_vm9 = vcmask 261120  }
  0x17   :  { %7243 = vst [vmem:[#allocation8_spill] sm:$0xff] %v5631_v20  ;;  %v367_v24 = vrot.slane %v365_v17, 5  ;;  %v4158_v26 = vcombine.low %v5623_v14, %v5631_v20  ;;  %vm817_vm10 = vcmask 1042432   ;;  %v5641_v29 = vsel %vm5613_vm8, %v341_v15, %v345_v8 }
  0x18   :  { %7244 = vst [vmem:[#allocation9_spill] sm:$0xff] %v5641_v29  ;;  %v355_v30 = vrot.slane %v354_v22, 4  ;;  %vm818_vm11 = vcmask 1046532   ;;  %v373_v48 = vrot.slane %v371_v23, 5  ;;  %v4196_v50 = vrot.slane %v5580_v41, 9  ;;  %v5402_v41 = vld [vmem:[%s7156_s1 + $0x8] sm:$0xff]  }
  0x19   :  { %v368_v47 = vor.u32 %v367_v24, %v364_v16  ;;  %4736 = vmatprep.mubr.msk.bf16.mxu0 %vm554_vm9, %v4158_v26  ;;  %vm5650_vm12 = vmor %vm817_vm10, %vm818_vm11  ;;  %v830_v51 = vrot.slane %v5584_v42, 5  ;;  %v83_v54 = vshrl.u32 %v35_v19, 16  ;;  %v86_v59 = vshll.u32 %v35_v19, 16 }
  0x1a   :  { %v5658_v52 = vsel %vm5613_vm8, %v355_v30, %v359_v13  ;;  %v90_v61 = vshrl.u32 %v36_v27, 16  ;;  %v93_v62 = vshll.u32 %v36_v27, 16  ;;  %v97_v63 = vshrl.u32 %v37_v33, 16 }
  0x1b   :  { %7247 = vst [vmem:[#allocation10_spill] sm:$0xff] %v5658_v52  ;;  %v369_v42 = vrot.slane %v368_v47, 4  ;;  %v5675_v57 = vcombine.low %v5641_v29, %v5658_v52  ;;  %v5679_v58 = vsel %vm5650_vm12, %v4196_v50, %v830_v51  ;;  %v85_v60 = vrot.slane %v83_v54, 7 }
  0x1c   :  { %v100_v2 = vshll.u32 %v37_v33, 16  ;;  %v111_v3 = vshrl.u32 %v39_v34, 16  ;;  %v114_v4 = vshll.u32 %v39_v34, 16  ;;  %v92_v8 = vrot.slane %v90_v61, 7 }
  0x1d   :  { %7248 = vst [vmem:[#allocation11_spill] sm:$0xff] %v5675_v57  ;;  %v5683_v0 = vsel %vm5613_vm8, %v369_v42, %v373_v48  ;;  %4737 = vmatmul.mubr.msk.bf16.vlgmr.msra.gmra.mrb[0].mxu0 %vm554_vm9, %v5675_v57  ;;  %v88_v7 = vor.u32 %v86_v59, %v85_v60  ;;  %v99_v9 = vrot.slane %v97_v63, 7  ;;  %v118_v11 = vshrl.u32 %v40_v55, 16 }
  0x1e   :  { %7249 = vst [vmem:[#allocation12_spill] sm:$0xff] %v5683_v0  ;;  %4753 = vmatpush3.bf16.msra.mxu0 %v5521_v18  ;;  %v113_v10 = vrot.slane %v111_v3, 7  ;;  %v121_v12 = vshll.u32 %v40_v55, 16  ;;  %v125_v13 = vshrl.u32 %v5668_v56, 16  ;;  %v95_v16 = vor.u32 %v93_v62, %v92_v8 }
  0x1f   :  { %4754 = vmatprep.subr.bf16.mxu0 %v5402_v41  ;;  %v191_v15 = vsel %vm5523_vm2, 0, %v88_v7  ;;  %v102_v17 = vor.u32 %v100_v2, %v99_v9  ;;  %v128_v19 = vshll.u32 %v5668_v56, 16  ;;  %v120_v23 = vrot.slane %v118_v11, 7 }
  0x20   :  { %v5701_v22 = vsel %vm5529_vm5, %v191_v15, 0  ;;  %v116_v18 = vor.u32 %v114_v4, %v113_v10  ;;  %v127_v24 = vrot.slane %v125_v13, 7  ;;  %v192_v30 = vsel %vm5523_vm2, 0, %v95_v16 }
  0x21   :  { %v5705_v26 = vcombine.low %v5701_v22, %v5701_v22  ;;  %v5709_v27 = vcombine.high %v5701_v22, %v5701_v22  ;;  %v193_v33 = vsel %vm5523_vm2, 0, %v102_v17  ;;  %v5717_v34 = vsel %vm5529_vm5, %v192_v30, 0 }
  0x22   :  { %4755 = vmatpush3.bf16.msra.mxu0 %v5402_v41  ;;  %v5721_v47 = vsel %vm5529_vm5, %v193_v33, 0  ;;  %v195_v48 = vsel %vm5523_vm2, 0, %v116_v18  ;;  %v123_v50 = vor.u32 %v121_v12, %v120_v23  ;;  %v5731_v56 = vcombine.low %v5717_v34, %v5717_v34  ;;  %v42_v18 = vld [vmem:[%s7155_s0 + $0x2c] sm:$0xf] }
  0x23   :  { %7251 = vst [vmem:[#allocation14_spill] sm:$0xff] %v5721_v47  ;;  %4772 = vmatprep.subr.bf16.mxu0 %v5690_v5  ;;  %v376_v51 = vshrl.u32 %v5705_v26, 16  ;;  %v379_v54 = vshll.u32 %v5705_v26, 16  ;;  %v385_v55 = vshll.u32 %v5709_v27, 16  ;;  %v5735_v41 = vcombine.high %v5717_v34, %v5717_v34 }
  0x24   :  { %v5739_v42 = vcombine.low %v5721_v47, %v5721_v47  ;;  %v5743_v59 = vcombine.high %v5721_v47, %v5721_v47  ;;  %v5747_v60 = vsel %vm5529_vm5, %v195_v48, 0  ;;  %v390_v2 = vshrl.u32 %v5731_v56, 16 }
  0x25   :  { %v378_v61 = vrot.slane %v376_v51, 4  ;;  %v381_v62 = vrot.slane %v379_v54, 5  ;;  %v387_v63 = vrot.slane %v385_v55, 5  ;;  %v393_v3 = vshll.u32 %v5731_v56, 16 }
  0x26   :  { %v399_v4 = vshll.u32 %v5735_v41, 16  ;;  %v404_v7 = vshrl.u32 %v5739_v42, 16  ;;  %v407_v8 = vshll.u32 %v5739_v42, 16  ;;  %v392_v10 = vrot.slane %v390_v2, 4 }
  0x27   :  { %v382_v9 = vor.u32 %v381_v62, %v378_v61  ;;  %v413_v11 = vshll.u32 %v5743_v59, 16  ;;  %v5757_v12 = vcombine.low %v5747_v60, %v5747_v60  ;;  %v395_v13 = vrot.slane %v393_v3, 5 }
  0x28   :  { %v401_v15 = vrot.slane %v399_v4, 5  ;;  %v406_v16 = vrot.slane %v404_v7, 4  ;;  %v409_v17 = vrot.slane %v407_v8, 5  ;;  %v5764_v33 = vcombine.high %v5747_v60, %v5747_v60 }
  0x29   :  { %v383_v23 = vrot.slane %v382_v9, 4  ;;  %v415_v30 = vrot.slane %v413_v11, 5  ;;  %v418_v48 = vshrl.u32 %v5757_v12, 16  ;;  %v396_v51 = vor.u32 %v395_v13, %v392_v10 }
  0x2a   :  { %v410_v54 = vor.u32 %v409_v17, %v406_v16  ;;  %v421_v55 = vshll.u32 %v5757_v12, 16  ;;  %v130_v61 = vor.u32 %v128_v19, %v127_v24  ;;  %v427_v3 = vshll.u32 %v5764_v33, 16 }
  0x2b   :  { %v5770_v62 = vsel %vm5613_vm8, %v383_v23, %v387_v63  ;;  %v420_v2 = vrot.slane %v418_v48, 4  ;;  %v196_v4 = vsel %vm5523_vm2, 0, %v123_v50  ;;  %v397_v8 = vrot.slane %v396_v51, 4  ;;  %v43_v51 = vld [vmem:[%s7155_s0 + $0x30] sm:$0xf] }
  0x2c   :  { %7252 = vst [vmem:[#allocation15_spill] sm:$0xff] %v5770_v62  ;;  %v5777_v7 = vcombine.low %v5683_v0, %v5770_v62  ;;  %v411_v9 = vrot.slane %v410_v54, 4  ;;  %v423_v10 = vrot.slane %v421_v55, 5  ;;  %v429_v11 = vrot.slane %v427_v3, 5  ;;  %v44_v3 = vld [vmem:[%s7155_s0 + $0x34] sm:$0xf] }
  0x2d   :  { %v197_v19 = vsel %vm5523_vm2, 0, %v130_v61  ;;  %v5783_v24 = vsel %vm5529_vm5, %v196_v4, 0  ;;  %v132_v63 = vshrl.u32 %v42_v18, 16  ;;  %v5789_v50 = vsel %vm5613_vm8, %v397_v8, %v401_v15 }
  0x2e   :  { %7253 = vst [vmem:[#allocation16_spill] sm:$0xff] %v5777_v7  ;;  %4740 = vmatprep.mubr.msk.bf16.mxu0 %vm554_vm9, %v5777_v7  ;;  %7254 = vst [vmem:[#allocation17_spill] sm:$0xff] %v5789_v50  ;;  %v5793_v13 = vsel %vm5613_vm8, %v411_v9, %v415_v30  ;;  %v424_v16 = vor.u32 %v423_v10, %v420_v2  ;;  %v5797_v17 = vsel %vm5529_vm5, %v197_v19, 0  ;;  %v135_v2 = vshll.u32 %v42_v18, 16 }
  0x2f   :  { %7255 = vst [vmem:[#allocation18_spill] sm:$0xff] %v5793_v13  ;;  %v5801_v23 = vcombine.low %v5789_v50, %v5793_v13  ;;  %v5805_v48 = vcombine.low %v5783_v24, %v5783_v24  ;;  %v5809_v15 = vcombine.high %v5783_v24, %v5783_v24  ;;  %v5813_v30 = vcombine.low %v5797_v17, %v5797_v17 }
  0x30   :  { %v425_v54 = vrot.slane %v424_v16, 4  ;;  %v5820_v55 = vcombine.high %v5797_v17, %v5797_v17  ;;  %v134_v61 = vrot.slane %v132_v63, 7 }
  0x31   :  { %7256 = vst [vmem:[#allocation19_spill] sm:$0xff] %v5801_v23  ;;  %4741 = vmatmul.mubr.msk.bf16.gmra.mrb[4].mxu0 %vm554_vm9, %v5801_v23  ;;  %v432_v4 = vshrl.u32 %v5805_v48, 16  ;;  %v435_v8 = vshll.u32 %v5805_v48, 16  ;;  %v441_v9 = vshll.u32 %v5809_v15, 16  ;;  %v446_v10 = vshrl.u32 %v5813_v30, 16 }
  0x32   :  { %v5833_v19 = vsel %vm5613_vm8, %v425_v54, %v429_v11  ;;  %v449_v18 = vshll.u32 %v5813_v30, 16  ;;  %v455_v63 = vshll.u32 %v5820_v55, 16  ;;  %v137_v16 = vor.u32 %v135_v2, %v134_v61 }
  0x33   :  { %7257 = vst [vmem:[#allocation20_spill] sm:$0xff] %v5833_v19 }
  0x34   :  { %13 = vsyncpa [#allocation3], 0  ;;  %v4162_v6 = vcombine.low %v5623_v14, %v5833_v19  ;;  %v434_v53 = vrot.slane %v432_v4, 4  ;;  %v437_v23 = vrot.slane %v435_v8, 5  ;;  %v443_v7 = vrot.slane %v441_v9, 5 }
  0x35   :  { %v448_v57 = vrot.slane %v446_v10, 4  ;;  %v451_v13 = vrot.slane %v449_v18, 5  ;;  %v457_v0 = vrot.slane %v455_v63, 5  ;;  %v139_v52 = vshrl.u32 %v43_v51, 16  ;;  %v45_v61 = vld [vmem:[%s7155_s0 + $0x38] sm:$0xf] }
  0x36   :  { %4744 = vmatprep.mubr.msk.bf16.mxu0 %vm554_vm9, %v4162_v6  ;;  %v438_v11 = vor.u32 %v437_v23, %v434_v53  ;;  %v142_v54 = vshll.u32 %v43_v51, 16  ;;  %v198_v29 = vsel %vm5523_vm2, 0, %v137_v16  ;;  %v146_v2 = vshrl.u32 %v44_v3, 16 }
  0x37   :  { %v452_v14 = vor.u32 %v451_v13, %v448_v57  ;;  %v141_v4 = vrot.slane %v139_v52, 7  ;;  %v5847_v8 = vsel %vm5529_vm5, %v198_v29, 0  ;;  %v149_v9 = vshll.u32 %v44_v3, 16 }
  0x38   :  { %v439_v10 = vrot.slane %v438_v11, 4  ;;  %v5851_v53 = vcombine.low %v5847_v8, %v5847_v8  ;;  %v5855_v6 = vcombine.high %v5847_v8, %v5847_v8  ;;  %v148_v23 = vrot.slane %v146_v2, 7 }
  0x39   :  { %v453_v51 = vrot.slane %v452_v14, 4  ;;  %v144_v18 = vor.u32 %v142_v54, %v141_v4  ;;  %v153_v63 = vshrl.u32 %v45_v61, 16  ;;  %v156_v57 = vshll.u32 %v45_v61, 16 }
  0x3a   :  { %v5859_v52 = vsel %vm5613_vm8, %v439_v10, %v443_v7  ;;  %v460_v29 = vshrl.u32 %v5851_v53, 16  ;;  %v463_v13 = vshll.u32 %v5851_v53, 16  ;;  %v469_v3 = vshll.u32 %v5855_v6, 16 }
  0x3b   :  { %7258 = vst [vmem:[#allocation21_spill] sm:$0xff] %v5859_v52  ;;  %v5866_v16 = vsel %vm5613_vm8, %v453_v51, %v457_v0  ;;  %v199_v14 = vsel %vm5523_vm2, 0, %v144_v18  ;;  %v151_v11 = vor.u32 %v149_v9, %v148_v23  ;;  %v155_v54 = vrot.slane %v153_v63, 7 }
  0x3c   :  { %7259 = vst [vmem:[#allocation22_spill] sm:$0xff] %v5866_v16  ;;  %v5872_v61 = vcombine.low %v5859_v52, %v5866_v16  ;;  %v5876_v7 = vsel %vm5529_vm5, %v199_v14, 0  ;;  %v462_v2 = vrot.slane %v460_v29, 4  ;;  %v465_v4 = vrot.slane %v463_v13, 5 }
  0x3d   :  { %7261 = vst [vmem:[#allocation24_spill] sm:$0xff] %v5876_v7  ;;  %v5880_v10 = vcombine.low %v5876_v7, %v5876_v7  ;;  %v5884_v0 = vcombine.high %v5876_v7, %v5876_v7  ;;  %v158_v9 = vor.u32 %v156_v57, %v155_v54  ;;  %v200_v51 = vsel %vm5523_vm2, 0, %v151_v11 }
  0x3e   :  { %7260 = vst [vmem:[#allocation23_spill] sm:$0xff] %v5872_v61  ;;  %4745 = vmatmul.mubr.msk.bf16.gmra.mrb[8].mxu0 %vm554_vm9, %v5872_v61  ;;  %v466_v23 = vor.u32 %v465_v4, %v462_v2  ;;  %v471_v14 = vrot.slane %v469_v3, 5  ;;  %v5897_v57 = vsel %vm5529_vm5, %v200_v51, 0  ;;  %v834_v50 = vrot.slane %v5592_v44, 5 }
  0x3f   :  { %v474_v18 = vshrl.u32 %v5880_v10, 16  ;;  %v477_v63 = vshll.u32 %v5880_v10, 16  ;;  %v483_v29 = vshll.u32 %v5884_v0, 16  ;;  %v201_v13 = vsel %vm5523_vm2, 0, %v158_v9  ;;  %7262 = vst [vmem:[#allocation25_spill] sm:$0xff] %v5897_v57 }
  0x40   :  { %v5901_v54 = vsel %vm5529_vm5, %v201_v13, 0  ;;  %v467_v2 = vrot.slane %v466_v23, 4  ;;  %v5905_v61 = vcombine.low %v5897_v57, %v5897_v57  ;;  %v5909_v20 = vcombine.high %v5897_v57, %v5897_v57 }
  0x41   :  { %7263 = vst [vmem:[#allocation26_spill] sm:$0xff] %v5901_v54  ;;  %v476_v11 = vrot.slane %v474_v18, 4  ;;  %v479_v4 = vrot.slane %v477_v63, 5  ;;  %v5913_v3 = vcombine.low %v5901_v54, %v5901_v54  ;;  %v5917_v9 = vcombine.high %v5901_v54, %v5901_v54 }
  0x42   :  { %v485_v23 = vrot.slane %v483_v29, 5  ;;  %v488_v18 = vshrl.u32 %v5905_v61, 16  ;;  %v491_v63 = vshll.u32 %v5905_v61, 16  ;;  %v497_v13 = vshll.u32 %v5909_v20, 16 }
  0x43   :  { %v480_v51 = vor.u32 %v479_v4, %v476_v11  ;;  %v502_v25 = vshrl.u32 %v5913_v3, 16  ;;  %v505_v21 = vshll.u32 %v5913_v3, 16  ;;  %v511_v47 = vshll.u32 %v5917_v9, 16 }
  0x44   :  { %v5927_v16 = vsel %vm5613_vm8, %v467_v2, %v471_v14  ;;  %v490_v19 = vrot.slane %v488_v18, 4  ;;  %v493_v11 = vrot.slane %v491_v63, 5  ;;  %v822_v29 = vrot.slane %v5548_v32, 5 }
  0x45   :  { %v481_v54 = vrot.slane %v480_v51, 4  ;;  %v826_v4 = vrot.slane %v5576_v40, 5  ;;  %v504_v52 = vrot.slane %v502_v25, 4  ;;  %v507_v62 = vrot.slane %v505_v21, 5 }
  0x46   :  { %v494_v7 = vor.u32 %v493_v11, %v490_v19  ;;  %v499_v57 = vrot.slane %v497_v13, 5  ;;  %v513_v51 = vrot.slane %v511_v47, 5  ;;  %v4194_v32 = vrot.slane %v5544_v31, 9 }
  0x47   :  { %v5934_v5 = vsel %vm5613_vm8, %v481_v54, %v485_v23  ;;  %v508_v2 = vor.u32 %v507_v62, %v504_v52  ;;  %v4195_v25 = vrot.slane %v5572_v39, 9  ;;  %v4197_v21 = vrot.slane %v5588_v43, 9 }
  0x48   :  { %v5938_v14 = vcombine.low %v5927_v16, %v5934_v5  ;;  %v495_v18 = vrot.slane %v494_v7, 4  ;;  %v4198_v40 = vrot.slane %v5596_v45, 9  ;;  %v5948_v19 = vsel %vm5650_vm12, %v4194_v32, %v822_v29 }
  0x49   :  { %v509_v44 = vrot.slane %v508_v2, 4  ;;  %7264 = vst [vmem:[#allocation27_spill] sm:$0xff] %v5948_v19  ;;  %v838_v62 = vrot.slane %v5600_v46, 5  ;;  %v4199_v47 = vrot.slane %v5705_v26, 9  ;;  %v5958_v39 = vsel %vm5650_vm12, %v4195_v25, %v826_v4 }
  0x4a   :  { %4748 = vmatprep.mubr.msk.bf16.mxu0 %vm554_vm9, %v5938_v14  ;;  %v5954_v31 = vsel %vm5613_vm8, %v495_v18, %v499_v57  ;;  %v5962_v43 = vsel %vm5650_vm12, %v4197_v21, %v834_v50  ;;  %v842_v45 = vrot.slane %v5709_v27, 5  ;;  %v4176_v46 = vcombine.low %v5535_v28, %v5556_v35 }
  0x4b   :  { %v5967_v52 = vsel %vm5613_vm8, %v509_v44, %v513_v51  ;;  %v5973_v26 = vcombine.low %v5679_v58, %v5962_v43  ;;  %v5977_v7 = vsel %vm5650_vm12, %v4198_v40, %v838_v62  ;;  %v4200_v54 = vrot.slane %v5731_v56, 9 }
  0x4c   :  { %v5981_v50 = vcombine.low %v5954_v31, %v5967_v52  ;;  %v5985_v27 = vsel %vm5650_vm12, %v4199_v47, %v842_v45  ;;  %v846_v63 = vrot.slane %v5735_v41, 5  ;;  %v4201_v13 = vrot.slane %v5739_v42, 9 }
  0x4d   :  { %v5992_v23 = vcombine.low %v5977_v7, %v5985_v27  ;;  %v850_v11 = vrot.slane %v5743_v59, 5  ;;  %v4202_v29 = vrot.slane %v5757_v12, 9  ;;  %v854_v4 = vrot.slane %v5764_v33, 5 }
  0x4e   :  { %4749 = vmatmul.mubr.msk.bf16.gmra.mrb[12].mxu0 %vm554_vm9, %v5981_v50  ;;  %v4203_v2 = vrot.slane %v5805_v48, 9  ;;  %v858_v56 = vrot.slane %v5809_v15, 5  ;;  %v6006_v41 = vsel %vm5650_vm12, %v4200_v54, %v846_v63  ;;  %v4204_v59 = vrot.slane %v5813_v30, 9  ;;  %v7266_v54 = vld [vmem:[#allocation25_spill] sm:$0xff]  ;;  %v7267_v63 = vld [vmem:[#allocation24_spill] sm:$0xff] }
  0x4f   :  { %4756 = vmatprep.mubr.msk.bf16.mxu0 %vm554_vm9, %v4176_v46  ;;  %v6010_v42 = vsel %vm5650_vm12, %v4201_v13, %v850_v11  ;;  %v862_v12 = vrot.slane %v5820_v55, 5  ;;  %v6020_v48 = vsel %vm5650_vm12, %v4202_v29, %v854_v4  ;;  %v4205_v51 = vrot.slane %v5851_v53, 9  ;;  %v7268_v11 = vld [vmem:[#allocation13_spill] sm:$0xff]  ;;  %v7270_v4 = vld [vmem:[#allocation15_spill] sm:$0xff] }
  0x50   :  { %v6016_v33 = vcombine.low %v6006_v41, %v6010_v42  ;;  %v6024_v15 = vsel %vm5650_vm12, %v4203_v2, %v858_v56  ;;  %v6029_v32 = vcombine.low %v5560_v36, %v5564_v37  ;;  %v866_v55 = vrot.slane %v5855_v6, 5  ;;  %v7269_v29 = vld [vmem:[#allocation17_spill] sm:$0xff]  ;;  %v5405_v56 = vld [vmem:[%s7156_s1 + $0x30] sm:$0xff]  }
  0x51   :  { %v6033_v30 = vsel %vm5650_vm12, %v4204_v59, %v862_v12  ;;  %v4206_v18 = vrot.slane %v5880_v10, 9  ;;  %v870_v21 = vrot.slane %v5884_v0, 5  ;;  %v4207_v53 = vrot.slane %v5905_v61, 9  ;;  %v5404_v0 = vld [vmem:[%s7156_s1 + $0x28] sm:$0xff]   ;;  %v7272_v12 = vld [vmem:[#allocation20_spill] sm:$0xff] }
  0x52   :  { %v6039_v25 = vcombine.low %v6024_v15, %v6033_v30  ;;  %v874_v40 = vrot.slane %v5909_v20, 5  ;;  %v6046_v44 = vcombine.low %v5568_v38, %v5701_v22  ;;  %v6050_v62 = vsel %vm5650_vm12, %v4205_v51, %v866_v55  ;;  %v7271_v59 = vld [vmem:[#allocation21_spill] sm:$0xff]  ;;  %v7273_v55 = vld [vmem:[#allocation22_spill] sm:$0xff] }
  0x53   :  { %v4208_v6 = vrot.slane %v5913_v3, 9  ;;  %v878_v10 = vrot.slane %v5917_v9, 5  ;;  %v6059_v61 = vsel %vm5650_vm12, %v4206_v18, %v870_v21  ;;  %v4229_v47 = vcombine.low %v5701_v22, %v5717_v34  ;;  %v5406_v21 = vld [vmem:[%s7156_s1 + $0x38] sm:$0xff]  }
  0x54   :  { %v6063_v20 = vsel %vm5650_vm12, %v4207_v53, %v874_v40  ;;  %v6069_v3 = vcombine.low %v6050_v62, %v6059_v61  ;;  %v6118_v40 = vcombine.low %v5783_v24, %v5797_v17  ;;  %v6124_v53 = vcombine.low %v5847_v8, %v7267_v63 }
  0x55   :  { %v6073_v9 = vsel %vm5650_vm12, %v4208_v6, %v878_v10  ;;  %v7274_v6 = vld [vmem:[#allocation14_spill] sm:$0xff]  ;;  %v4213_v18 = vcombine.low %v5948_v19, %v6020_v48  ;;  %v4228_v13 = vcombine.low %v5564_v37, %v5568_v38  ;;  %vm2545_vm13 = vcmask 130048  }
  0x56   :  { %7265 = vst [vmem:[#allocation28_spill] sm:$0xff] %v6069_v3  ;;  %4757 = vmatmul.mubr.msk.bf16.vlgmr.msra.gmra.mrb[0].mxu0 %vm554_vm9, %v6029_v32  ;;  %v6079_v45 = vcombine.low %v6063_v20, %v6073_v9  ;;  %v6107_v10 = vcombine.low %v5717_v34, %v7274_v6  ;;  %v4209_v34 = vcombine.low %v5948_v19, %v5958_v39  ;;  %v5409_v38 = vld [vmem:[%s7156_s1 + $0x50] sm:$0xff]   ;;  %vm5452_vm14 = vmmov 0  }
  0x57   :  { %4773 = vmatpush3.bf16.msra.mxu0 %v7268_v11  ;;  %4760 = vmatprep.mubr.msk.bf16.mxu0 %vm554_vm9, %v6046_v44  ;;  %v4180_v11 = vcombine.low %v5535_v28, %v5747_v60  ;;  %vm4039_vm15 = vcmask 64512  }
  0x58   :  { %4774 = vmatprep.subr.bf16.mxu0 %v5404_v0 }
  0x5b   :  { %4775 = vmatpush3.bf16.msra.mxu0 %v5404_v0  ;;  %v5407_v0 = vld [vmem:[%s7156_s1 + $0x40] sm:$0xff]  }
  0x5c   :  { %4792 = vmatprep.subr.bf16.mxu0 %v5405_v56 }
  0x5e   :  { %4761 = vmatmul.mubr.msk.bf16.gmra.mrb[4].mxu0 %vm554_vm9, %v6107_v10 }
  0x5f   :  { %4764 = vmatprep.mubr.msk.bf16.mxu0 %vm554_vm9, %v4180_v11  ;;  %v7275_v11 = vld [vmem:[#allocation26_spill] sm:$0xff] }
  0x60   :  { %v6134_v57 = vcombine.low %v7266_v54, %v7275_v11 }
  0x66   :  { %4765 = vmatmul.mubr.msk.bf16.gmra.mrb[8].mxu0 %vm554_vm9, %v6118_v40 }
  0x67   :  { %4768 = vmatprep.mubr.msk.bf16.mxu0 %vm554_vm9, %v6124_v53 }
  0x6e   :  { %4769 = vmatmul.mubr.msk.bf16.gmra.mrb[12].mxu0 %vm554_vm9, %v6134_v57 }
  0x6f   :  { %4776 = vmatprep.mubr.msk.bf16.mxu0 %vm554_vm9, %v4209_v34 }
  0x76   :  { %4777 = vmatmul.mubr.msk.bf16.vlgmr.msra.gmra.mrb[0].mxu0 %vm554_vm9, %v5973_v26 }
  0x77   :  { %4793 = vmatpush3.bf16.msra.mxu0 %v5405_v56  ;;  %4780 = vmatprep.mubr.msk.bf16.mxu0 %vm554_vm9, %v5992_v23  ;;  %v38_v56 = vld [vmem:[%s7155_s0 + $0x1c] sm:$0xf] }
  0x78   :  { %4794 = vmatprep.subr.bf16.mxu0 %v5406_v21  ;;  %v104_v34 = vshrl.u32 %v38_v56, 16  ;;  %v107_v2 = vshll.u32 %v38_v56, 16 }
  0x7a   :  { %v106_v51 = vrot.slane %v104_v34, 7 }
  0x7b   :  { %4795 = vmatpush3.bf16.msra.mxu0 %v5406_v21  ;;  %v4227_v21 = vcombine.low %v5556_v35, %v5560_v36  ;;  %v46_v35 = vld [vmem:[%s7155_s0 + $0x3c] sm:$0xf] }
  0x7c   :  { %4812 = vmatprep.subr.bf16.mxu0 %v5407_v0  ;;  %v160_v37 = vshrl.u32 %v46_v35, 16  ;;  %v163_v34 = vshll.u32 %v46_v35, 16 }
  0x7e   :  { %4781 = vmatmul.mubr.msk.bf16.gmra.mrb[4].mxu0 %vm554_vm9, %v6016_v33  ;;  %v162_v56 = vrot.slane %v160_v37, 7  ;;  %v7281_v37 = vld [vmem:[#allocation8_spill] sm:$0xff] }
  0x7f   :  { %4784 = vmatprep.mubr.msk.bf16.mxu0 %vm554_vm9, %v4213_v18  ;;  %v109_v18 = vor.u32 %v107_v2, %v106_v51 }
  0x81   :  { %v194_v46 = vsel %vm5523_vm2, 0, %v109_v18 }
  0x82   :  { %v6182_v2 = vsel %vm5529_vm5, %v194_v46, 0  ;;  %v165_v46 = vor.u32 %v163_v34, %v162_v56 }
  0x83   :  { %v4230_v51 = vcombine.low %v7274_v6, %v6182_v2  ;;  %v7280_v6 = vcombine.low %v7267_v63, %v7266_v54  ;;  %v4246_v35 = vcombine.high %v6182_v2, %v6182_v2  ;;  %v7282_v54 = vld [vmem:[#allocation9_spill] sm:$0xff] }
  0x84   :  { %v7283_v63 = vcombine.low %v7281_v37, %v7282_v54  ;;  %v7288_v37 = vld [vmem:[#allocation18_spill] sm:$0xff] }
  0x85   :  { %v1237_v56 = vshll.u32 %v4246_v35, 16 }
  0x86   :  { %4785 = vmatmul.mubr.msk.bf16.gmra.mrb[8].mxu0 %vm554_vm9, %v6039_v25 }
  0x87   :  { %4788 = vmatprep.mubr.msk.bf16.mxu0 %vm554_vm9, %v6069_v3  ;;  %v5408_v3 = vld [vmem:[%s7156_s1 + $0x48] sm:$0xff]  }
  0x8e   :  { %4789 = vmatmul.mubr.msk.bf16.gmra.mrb[12].mxu0 %vm554_vm9, %v6079_v45 }
  0x8f   :  { %4796 = vmatprep.mubr.msk.bf16.mxu0 %vm554_vm9, %v4227_v21 }
  0x96   :  { %4797 = vmatmul.mubr.msk.bf16.vlgmr.msra.gmra.mrb[0].mxu0 %vm554_vm9, %v4228_v13  ;;  %v4245_v13 = vcombine.low %v6182_v2, %v6182_v2 }
  0x97   :  { %4813 = vmatpush3.bf16.msra.mxu0 %v5407_v0  ;;  %4800 = vmatprep.mubr.msk.bf16.mxu0 %vm554_vm9, %v4229_v47  ;;  %v7278_v47 = vcombine.low %v5747_v60, %v5783_v24  ;;  %v202_v0 = vsel %vm5523_vm2, 0, %v165_v46  ;;  %v1239_v46 = vrot.slane %v1237_v56, 5 }
  0x98   :  { %4814 = vmatprep.subr.bf16.mxu0 %v5408_v3  ;;  %v6208_v60 = vsel %vm5529_vm5, %v202_v0, 0  ;;  %v1228_v24 = vshrl.u32 %v4245_v13, 16  ;;  %v1231_v21 = vshll.u32 %v4245_v13, 16  ;;  %v7284_v0 = vld [vmem:[#allocation10_spill] sm:$0xff] }
  0x99   :  { %v4234_v18 = vcombine.low %v7275_v11, %v6208_v60  ;;  %v4247_v34 = vcombine.low %v6208_v60, %v6208_v60  ;;  %v5410_v11 = vld [vmem:[%s7156_s1 + $0x58] sm:$0xff]  }
  0x9b   :  { %4815 = vmatpush3.bf16.msra.mxu0 %v5408_v3  ;;  %v7279_v3 = vcombine.low %v5797_v17, %v5847_v8  ;;  %v1230_v17 = vrot.slane %v1228_v24, 4  ;;  %v1233_v8 = vrot.slane %v1231_v21, 5  ;;  %v7287_v24 = vcombine.low %v7270_v4, %v7269_v29 }
  0x9c   :  { %4832 = vmatprep.subr.bf16.mxu0 %v5409_v38  ;;  %v4248_v29 = vcombine.high %v6208_v60, %v6208_v60 }
  0x9e   :  { %4801 = vmatmul.mubr.msk.bf16.gmra.mrb[4].mxu0 %vm554_vm9, %v4230_v51  ;;  %v1234_v51 = vor.u32 %v1233_v8, %v1230_v17  ;;  %v1245_v17 = vshll.u32 %v4247_v34, 16  ;;  %v5411_v8 = vld [vmem:[%s7156_s1 + $0x60] sm:$0xff]   ;;  %v1251_v56 = vshll.u32 %v4248_v29, 16 }
  0x9f   :  { %4804 = vmatprep.mubr.msk.bf16.mxu0 %vm554_vm9, %v7278_v47 }
  0xa0   :  { %v1235_v47 = vrot.slane %v1234_v51, 4 }
  0xa2   :  { %v6234_v21 = vsel %vm5613_vm8, %v1235_v47, %v1239_v46  ;;  %v1253_v46 = vrot.slane %v1251_v56, 5 }
  0xa3   :  { %v4252_v54 = vcombine.low %v7288_v37, %v6234_v21 }
  0xa6   :  { %4805 = vmatmul.mubr.msk.bf16.gmra.mrb[8].mxu0 %vm554_vm9, %v7279_v3  ;;  %v7285_v3 = vld [vmem:[#allocation12_spill] sm:$0xff] }
  0xa7   :  { %4808 = vmatprep.mubr.msk.bf16.mxu0 %vm554_vm9, %v7280_v6  ;;  %v7286_v6 = vcombine.low %v7284_v0, %v7285_v3  ;;  %v7291_v0 = vcombine.low %v5934_v5, %v5954_v31  ;;  %v5412_v5 = vld [vmem:[%s7156_s1 + $0x68] sm:$0xff]   ;;  %v7293_v31 = vcombine.low %v5962_v43, %v5977_v7  ;;  %v7295_v43 = vcombine.low %v6020_v48, %v6024_v15  ;;  %v5414_v48 = vld [vmem:[%s7156_s1 + $0x78] sm:$0xff]   ;;  %v5415_v15 = vld [vmem:[%s7156_s1 + $0x80] sm:$0xff]  }
  0xa8   :  { %v4268_v7 = vrot.slane %v4247_v34, 9 }
  0xae   :  { %4809 = vmatmul.mubr.msk.bf16.gmra.mrb[12].mxu0 %vm554_vm9, %v4234_v18  ;;  %v1242_v18 = vshrl.u32 %v4247_v34, 16 }
  0xaf   :  { %4816 = vmatprep.mubr.msk.bf16.mxu0 %vm554_vm9, %v7283_v63  ;;  %v7289_v63 = vcombine.low %v7272_v12, %v7271_v59  ;;  %v7292_v12 = vcombine.low %v5958_v39, %v5679_v58  ;;  %v5413_v39 = vld [vmem:[%s7156_s1 + $0x70] sm:$0xff]  }
  0xb0   :  { %v1244_v4 = vrot.slane %v1242_v18, 4 }
  0xb6   :  { %4817 = vmatmul.mubr.msk.bf16.vlgmr.msra.gmra.mrb[0].mxu0 %vm554_vm9, %v7286_v6 }
  0xb7   :  { %4833 = vmatpush3.bf16.msra.mxu0 %v5409_v38  ;;  %4820 = vmatprep.mubr.msk.bf16.mxu0 %vm554_vm9, %v7287_v24  ;;  %v1247_v38 = vrot.slane %v1245_v17, 5 }
  0xb8   :  { %4834 = vmatprep.subr.bf16.mxu0 %v5410_v11 }
  0xb9   :  { %v1248_v51 = vor.u32 %v1247_v38, %v1244_v4 }
  0xbb   :  { %4835 = vmatpush3.bf16.msra.mxu0 %v5410_v11  ;;  %v1249_v47 = vrot.slane %v1248_v51, 4  ;;  %v7290_v11 = vcombine.low %v7273_v55, %v5927_v16  ;;  %v4267_v16 = vrot.slane %v4245_v13, 9  ;;  %v1420_v55 = vrot.slane %v4246_v35, 5 }
  0xbc   :  { %4852 = vmatprep.subr.bf16.mxu0 %v5411_v8  ;;  %v7297_v35 = vcombine.low %v6059_v61, %v6063_v20  ;;  %v7299_v61 = vld [vmem:[#allocation16_spill] sm:$0xff]  ;;  %v7300_v20 = vld [vmem:[#allocation19_spill] sm:$0xff] }
  0xbd   :  { %v1254_v3 = vsel %vm5613_vm8, %v1249_v47, %v1253_v46  ;;  %v1421_v58 = vsel %vm5650_vm12, %v4267_v16, %v1420_v55 }
  0xbe   :  { %4821 = vmatmul.mubr.msk.bf16.gmra.mrb[4].mxu0 %vm554_vm9, %v4252_v54  ;;  %v4256_v59 = vcombine.low %v5967_v52, %v1254_v3  ;;  %v7294_v52 = vcombine.low %v5985_v27, %v6006_v41  ;;  %v4272_v13 = vcombine.low %v6010_v42, %v1421_v58  ;;  %v1424_v27 = vrot.slane %v4248_v29, 5 }
  0xbf   :  { %4824 = vmatprep.mubr.msk.bf16.mxu0 %vm554_vm9, %v7289_v63  ;;  %v7296_v41 = vcombine.low %v6033_v30, %v6050_v62  ;;  %v4287_v30 = vcombine.low %v6182_v2, %v5535_v28  ;;  %v5416_v62 = vld [vmem:[%s7156_s1 + $0x88] sm:$0xff]   ;;  %s5454_s1 = smov [#allocation2]  }
  0xc0   :  { %v1425_v42 = vsel %vm5650_vm12, %v4268_v7, %v1424_v27  ;;  %s4120_s28 = sshll.u32 %s5454_s1, 4  ;;  %s4121_s28 = int_to_ptr.vmem [resolvable:$true] %s4120_s28 }
  0xc1   :  { %v4276_v6 = vcombine.low %v6073_v9, %v1425_v42  ;;  %s5426_s29 = scalar_lea.vmem %s4121_s28, 32  ;;  %p5431_p1 = scmp.lt.s32.totalorder %s4121_s28, %s4121_s28 }
  0xc2   :  { %p5427_p0 = scmp.ne.s32.totalorder %s4121_s28, %s5426_s29  ;;  %p5432_p2 = scmp.lt.s32.totalorder %s5426_s29, %s5426_s29 }
  0xc4   :  { %p5433_p3 = por %p5432_p2, %p5431_p1 }
  0xc6   :  { %4825 = vmatmul.mubr.msk.bf16.gmra.mrb[8].mxu0 %vm554_vm9, %v7290_v11  ;;  %p5434_p4 = pnand %p5433_p3, %p5427_p0 }
  0xc7   :  { %4828 = vmatprep.mubr.msk.bf16.mxu0 %vm554_vm9, %v7291_v0 }
  0xce   :  { %4829 = vmatmul.mubr.msk.bf16.gmra.mrb[12].mxu0 %vm554_vm9, %v4256_v59 }
  0xcf   :  { %4836 = vmatprep.mubr.msk.bf16.mxu0 %vm554_vm9, %v7292_v12 }
  0xd6   :  { %4837 = vmatmul.mubr.msk.bf16.vlgmr.msra.gmra.mrb[0].mxu0 %vm554_vm9, %v7293_v31 }
  0xd7   :  { %4853 = vmatpush3.bf16.msra.mxu0 %v5411_v8  ;;  %4840 = vmatprep.mubr.msk.bf16.mxu0 %vm554_vm9, %v7294_v52 }
  0xd8   :  { %4854 = vmatprep.subr.bf16.mxu0 %v5412_v5 }
  0xdb   :  { %4855 = vmatpush3.bf16.msra.mxu0 %v5412_v5 }
  0xdc   :  { %4872 = vmatprep.subr.bf16.mxu0 %v5413_v39 }
  0xde   :  { %4841 = vmatmul.mubr.msk.bf16.gmra.mrb[4].mxu0 %vm554_vm9, %v4272_v13 }
  0xdf   :  { %4844 = vmatprep.mubr.msk.bf16.mxu0 %vm554_vm9, %v7295_v43 }
  0xe6   :  { %4845 = vmatmul.mubr.msk.bf16.gmra.mrb[8].mxu0 %vm554_vm9, %v7296_v41 }
  0xe7   :  { %4848 = vmatprep.mubr.msk.bf16.mxu0 %vm554_vm9, %v7297_v35 }
  0xee   :  { %4849 = vmatmul.mubr.msk.bf16.gmra.mrb[12].mxu0 %vm554_vm9, %v4276_v6 }
  0xef   :  { %4856 = vmatprep.mubr.msk.bf16.mxu0 %vm554_vm9, %v6029_v32  ;;  %v4288_v32 = vcombine.low %v6208_v60, %v5535_v28 }
  0xf6   :  { %4857 = vmatmul.mubr.msk.bf16.vlgmr.msra.gmra.mrb[0].mxu0 %vm554_vm9, %v6046_v44  ;;  %v7298_v44 = vld [vmem:[#allocation11_spill] sm:$0xff] }
  0xf7   :  { %4873 = vmatpush3.bf16.msra.mxu0 %v5413_v39  ;;  %4860 = vmatprep.mubr.msk.bf16.mxu0 %vm554_vm9, %v6107_v10  ;;  %v4311_v10 = vcombine.low %v1421_v58, %v5948_v19 }
  0xf8   :  { %4874 = vmatprep.subr.bf16.mxu0 %v5414_v48 }
  0xfb   :  { %4875 = vmatpush3.bf16.msra.mxu0 %v5414_v48 }
  0xfc   :  { %4892 = vmatprep.subr.bf16.mxu0 %v5415_v15 }
  0xfe   :  { %4861 = vmatmul.mubr.msk.bf16.gmra.mrb[4].mxu0 %vm554_vm9, %v4287_v30 }
  0xff   :  { %4864 = vmatprep.mubr.msk.bf16.mxu0 %vm554_vm9, %v6118_v40 }
 0x106   :  { %4865 = vmatmul.mubr.msk.bf16.gmra.mrb[8].mxu0 %vm554_vm9, %v6124_v53  ;;  %v7302_v53 = vld [vmem:[#allocation23_spill] sm:$0xff] }
 0x107   :  { %4868 = vmatprep.mubr.msk.bf16.mxu0 %vm554_vm9, %v6134_v57  ;;  %v7301_v57 = vld [vmem:[#allocation7_spill] sm:$0xff] }
 0x108   :  { %v4299_v9 = vcombine.low %v6234_v21, %v7301_v57  ;;  %v4300_v40 = vcombine.low %v1254_v3, %v7301_v57 }
 0x10e   :  { %4869 = vmatmul.mubr.msk.bf16.gmra.mrb[12].mxu0 %vm554_vm9, %v4288_v32 }
 0x10f   :  { %4876 = vmatprep.mubr.msk.bf16.mxu0 %vm554_vm9, %v7298_v44 }
 0x116   :  { %4877 = vmatmul.mubr.msk.bf16.vlgmr.msra.gmra.mrb[0].mxu0 %vm554_vm9, %v7299_v61 }
 0x117   :  { %4893 = vmatpush3.bf16.msra.mxu0 %v5415_v15  ;;  %4880 = vmatprep.mubr.msk.bf16.mxu0 %vm554_vm9, %v7300_v20 }
 0x118   :  { %4894 = vmatprep.subr.bf16.mxu0 %v5416_v62 }
 0x11b   :  { %4895 = vmatpush3.bf16.msra.mxu0 %v5416_v62 }
 0x11e   :  { %4881 = vmatmul.mubr.msk.bf16.gmra.mrb[4].mxu0 %vm554_vm9, %v4299_v9 }
 0x11f   :  { %4884 = vmatprep.mubr.msk.bf16.mxu0 %vm554_vm9, %v7302_v53 }
 0x126   :  { %4885 = vmatmul.mubr.msk.bf16.gmra.mrb[8].mxu0 %vm554_vm9, %v5938_v14  ;;  %v7303_v14 = vld [vmem:[#allocation28_spill] sm:$0xff] }
 0x127   :  { %4888 = vmatprep.mubr.msk.bf16.mxu0 %vm554_vm9, %v5981_v50  ;;  %v5417_v50 = vld [vmem:[%s7158_s3 + $0x8] sm:$0xff]  }
 0x128   :  { %4912 = vmatprep.subr.bf16.mxu1 %v5417_v50 }
 0x129   :  { %4913 = vmatpush3.bf16.msra.mxu1 %v5417_v50 }
 0x12e   :  { %4889 = vmatmul.mubr.msk.bf16.gmra.mrb[12].mxu0 %vm554_vm9, %v4300_v40 }
 0x12f   :  { %4896 = vmatprep.mubr.msk.bf16.mxu0 %vm554_vm9, %v5973_v26  ;;  %v4312_v26 = vcombine.low %v1425_v42, %v5948_v19 }
 0x136   :  { %4897 = vmatmul.mubr.msk.bf16.vlgmr.msra.gmra.mrb[0].mxu0 %vm554_vm9, %v5992_v23  ;;  %v6364_v23 = vld [vmem:[%s7158_s3] sm:$0xff]  }
 0x137   :  { %4900 = vmatprep.mubr.msk.bf16.mxu0 %vm554_vm9, %v6016_v33  ;;  %4930 = vmatprep.subr.bf16.mxu1 %v6364_v23  ;;  %v6370_v33 = vld [vmem:[%s7157_s2] ss:$0 sm:$0xff] }
 0x13e   :  { %4901 = vmatmul.mubr.msk.bf16.gmra.mrb[4].mxu0 %vm554_vm9, %v4311_v10 }
 0x13f   :  { %4904 = vmatprep.mubr.msk.bf16.mxu0 %vm554_vm9, %v6039_v25 }
 0x146   :  { %4905 = vmatmul.mubr.msk.bf16.gmra.mrb[8].mxu0 %vm554_vm9, %v7303_v14 }
 0x147   :  { %4908 = vmatprep.mubr.msk.bf16.mxu0 %vm554_vm9, %v6079_v45 }
 0x14e   :  { %4909 = vmatmul.mubr.msk.bf16.gmra.mrb[12].mxu0 %vm554_vm9, %v4312_v26 }
 0x209   :  { %v4898_v25 = vpop.f32.mrb[0].mxu0 }
 0x20a   :  { %v2009_v45 = vadd.f32 %v4898_v25, %v6370_v33  ;;  %v1921_v2 = vpop.f32.mrb[1].mxu0 }
 0x20b   :  { %v2007_v60 = vadd.f32 %v6370_v33, %v1921_v2  ;;  %v4899_v34 = vpop.f32.mrb[2].mxu0 }
 0x20c   :  { %v2025_v24 = vmax.f32 %v2009_v45, 0.0  ;;  %v2010_v21 = vadd.f32 %v4899_v34, %v6370_v33  ;;  %v1924_v18 = vpop.f32.mrb[3].mxu0 }
 0x20d   :  { %v2023_v17 = vmax.f32 %v2007_v60, 0.0  ;;  %v2008_v8 = vadd.f32 %v6370_v33, %v1924_v18 }
 0x20e   :  { %v4528_v37 = vpack.c.bf16 %v2025_v24, %v2025_v24  ;;  %v2026_v54 = vmax.f32 %v2010_v21, 0.0 }
 0x20f   :  { %v4526_v29 = vpack.c.bf16 %v2023_v17, %v2023_v17  ;;  %v2024_v4 = vmax.f32 %v2008_v8, 0.0 }
 0x210   :  { %v2102_v38 = vshrl.u32 %v4528_v37, 16  ;;  %v4529_v63 = vpack.c.bf16 %v2026_v54, %v2026_v54  ;;  %v2105_v11 = vshll.u32 %v4528_v37, 16 }
 0x211   :  { %v2088_v51 = vshrl.u32 %v4526_v29, 16  ;;  %v4527_v56 = vpack.c.bf16 %v2024_v4, %v2024_v4  ;;  %v4902_v47 = vpop.f32.mrb[4].mxu0  ;;  %v2091_v13 = vshll.u32 %v4526_v29, 16 }
 0x212   :  { %v2104_v46 = vrot.slane %v2102_v38, 7  ;;  %v2109_v0 = vshrl.u32 %v4529_v63, 16  ;;  %v2013_v3 = vadd.f32 %v4902_v47, %v6370_v33  ;;  %v1937_v59 = vpop.f32.mrb[5].mxu0  ;;  %v2112_v48 = vshll.u32 %v4529_v63, 16 }
 0x213   :  { %v2090_v12 = vrot.slane %v2088_v51, 7  ;;  %v2095_v16 = vshrl.u32 %v4527_v56, 16  ;;  %v2011_v55 = vadd.f32 %v6370_v33, %v1937_v59  ;;  %v4903_v5 = vpop.f32.mrb[6].mxu0  ;;  %v2098_v6 = vshll.u32 %v4527_v56, 16 }
 0x214   :  { %v2107_v31 = vor.u32 %v2105_v11, %v2104_v46  ;;  %v2029_v52 = vmax.f32 %v2013_v3, 0.0  ;;  %v6379_v58 = vadd.f32 %v4903_v5, %v6370_v33  ;;  %v1940_v39 = vpop.f32.mrb[7].mxu0  ;;  %v2111_v41 = vrot.slane %v2109_v0, 7 }
 0x215   :  { %v2097_v43 = vrot.slane %v2095_v16, 7  ;;  %v2027_v7 = vmax.f32 %v2011_v55, 0.0  ;;  %v2093_v42 = vor.u32 %v2091_v13, %v2090_v12  ;;  %v2012_v62 = vadd.f32 %v6370_v33, %v1940_v39 }
 0x216   :  { %7304 = vst [vmem:[#allocation25_spill] sm:$0xff] %v6379_v58  ;;  %v2217_v27 = vsel %vm5523_vm2, 0, %v2107_v31  ;;  %v4532_v35 = vpack.c.bf16 %v2029_v52, %v2029_v52  ;;  %v2114_v20 = vor.u32 %v2112_v48, %v2111_v41 }
 0x217   :  { %v4530_v15 = vpack.c.bf16 %v2027_v7, %v2027_v7  ;;  %v6385_v30 = vsel %vm5529_vm5, %v2217_v27, 0  ;;  %v2100_v32 = vor.u32 %v2098_v6, %v2097_v43  ;;  %v2215_v53 = vsel %vm5523_vm2, 0, %v2093_v42 }
 0x218   :  { %v2130_v44 = vshrl.u32 %v4532_v35, 16  ;;  %v6392_v10 = vcombine.low %v6385_v30, %v6385_v30  ;;  %v2028_v45 = vmax.f32 %v2012_v62, 0.0  ;;  %v6399_v60 = vsel %vm5529_vm5, %v2215_v53, 0 }
 0x219   :  { %v4906_v61 = vpop.f32.mrb[8].mxu0  ;;  %v2116_v14 = vshrl.u32 %v4530_v15, 16  ;;  %v2216_v50 = vsel %vm5523_vm2, 0, %v2100_v32  ;;  %v2218_v34 = vsel %vm5523_vm2, 0, %v2114_v20  ;;  %v2133_v18 = vshll.u32 %v4532_v35, 16 }
 0x21a   :  { %v1953_v9 = vpop.f32.mrb[9].mxu0  ;;  %v2132_v25 = vrot.slane %v2130_v44, 7  ;;  %v2017_v2 = vadd.f32 %v4906_v61, %v6370_v33  ;;  %v2119_v17 = vshll.u32 %v4530_v15, 16  ;;  %v4531_v8 = vpack.c.bf16 %v2028_v45, %v2028_v45 }
 0x21b   :  { %v4907_v40 = vpop.f32.mrb[10].mxu0  ;;  %v2118_v24 = vrot.slane %v2116_v14, 7  ;;  %v2015_v21 = vadd.f32 %v6370_v33, %v1953_v9  ;;  %v6407_v54 = vcombine.high %v6385_v30, %v6385_v30  ;;  %v6411_v29 = vsel %vm5529_vm5, %v2216_v50, 0 }
 0x21c   :  { %v1956_v26 = vpop.f32.mrb[11].mxu0  ;;  %v2018_v37 = vadd.f32 %v4907_v40, %v6370_v33  ;;  %7305 = vst [vmem:[#allocation24_spill] sm:$0xff] %v6411_v29  ;;  %v2033_v4 = vmax.f32 %v2017_v2, 0.0  ;;  %v6415_v63 = vsel %vm5529_vm5, %v2218_v34, 0  ;;  %v2135_v51 = vor.u32 %v2133_v18, %v2132_v25 }
 0x21d   :  { %v2031_v38 = vmax.f32 %v2015_v21, 0.0  ;;  %7306 = vst [vmem:[#allocation13_spill] sm:$0xff] %v6415_v63  ;;  %v2121_v56 = vor.u32 %v2119_v17, %v2118_v24  ;;  %v2123_v47 = vshrl.u32 %v4531_v8, 16  ;;  %v6420_v0 = vcombine.low %v6399_v60, %v6399_v60 }
 0x21e   :  { %v4536_v3 = vpack.c.bf16 %v2033_v4, %v2033_v4  ;;  %v6424_v16 = vcombine.low %v6411_v29, %v6411_v29  ;;  %v2126_v5 = vshll.u32 %v4531_v8, 16  ;;  %v2034_v31 = vmax.f32 %v2018_v37, 0.0 }
 0x21f   :  { %v4534_v59 = vpack.c.bf16 %v2031_v38, %v2031_v38  ;;  %v2125_v55 = vrot.slane %v2123_v47, 7  ;;  %v6429_v13 = vcombine.low %v6415_v63, %v6415_v63  ;;  %v6433_v43 = vcombine.high %v6415_v63, %v6415_v63 }
 0x220   :  { %v2158_v7 = vshrl.u32 %v4536_v3, 16  ;;  %v2221_v41 = vsel %vm5523_vm2, 0, %v2135_v51  ;;  %v2219_v35 = vsel %vm5523_vm2, 0, %v2121_v56  ;;  %v2161_v15 = vshll.u32 %v4536_v3, 16 }
 0x221   :  { %v4910_v46 = vpop.f32.mrb[12].mxu0  ;;  %v2128_v42 = vor.u32 %v2126_v5, %v2125_v55  ;;  %v2144_v6 = vshrl.u32 %v4534_v59, 16  ;;  %v4537_v32 = vpack.c.bf16 %v2034_v31, %v2034_v31  ;;  %v2016_v44 = vadd.f32 %v6370_v33, %v1956_v26 }
 0x222   :  { %v1969_v12 = vpop.f32.mrb[13].mxu0  ;;  %v2160_v48 = vrot.slane %v2158_v7, 7  ;;  %v2147_v9 = vshll.u32 %v4534_v59, 16  ;;  %v6445_v53 = vsel %vm5529_vm5, %v2221_v41, 0  ;;  %v6449_v40 = vsel %vm5529_vm5, %v2219_v35, 0 }
 0x223   :  { %v4911_v52 = vpop.f32.mrb[14].mxu0  ;;  %v2220_v61 = vsel %vm5523_vm2, 0, %v2128_v42  ;;  %v2146_v20 = vrot.slane %v2144_v6, 7  ;;  %7307 = vst [vmem:[#allocation17_spill] sm:$0xff] %v6445_v53  ;;  %7308 = vst [vmem:[#allocation15_spill] sm:$0xff] %v6449_v40  ;;  %v2165_v50 = vshrl.u32 %v4537_v32, 16  ;;  %v2021_v21 = vadd.f32 %v4910_v46, %v6370_v33 }
 0x224   :  { %v1972_v27 = vpop.f32.mrb[15].mxu0  ;;  %v2163_v14 = vor.u32 %v2161_v15, %v2160_v48  ;;  %v6453_v26 = vsel %vm5529_vm5, %v2220_v61, 0  ;;  %v2168_v45 = vshll.u32 %v4537_v32, 16  ;;  %v2032_v2 = vmax.f32 %v2016_v44, 0.0 }
 0x225   :  { %7309 = vst [vmem:[#allocation21_spill] sm:$0xff] %v6453_v26  ;;  %v2149_v25 = vor.u32 %v2147_v9, %v2146_v20  ;;  %v2167_v24 = vrot.slane %v2165_v50, 7  ;;  %v2019_v18 = vadd.f32 %v6370_v33, %v1969_v12  ;;  %v6461_v17 = vcombine.low %v6445_v53, %v6445_v53 }
 0x226   :  { %v2225_v34 = vsel %vm5523_vm2, 0, %v2163_v14  ;;  %v4535_v37 = vpack.c.bf16 %v2032_v2, %v2032_v2  ;;  %v2022_v4 = vadd.f32 %v4911_v52, %v6370_v33  ;;  %v6468_v38 = vcombine.high %v6445_v53, %v6445_v53 }
 0x227   :  { %v2223_v8 = vsel %vm5523_vm2, 0, %v2149_v25  ;;  %v6472_v51 = vcombine.low %v6449_v40, %v6449_v40  ;;  %v6476_v56 = vcombine.high %v6449_v40, %v6449_v40  ;;  %v2170_v47 = vor.u32 %v2168_v45, %v2167_v24 }
 0x228   :  { %v6480_v46 = vcombine.low %v6453_v26, %v6453_v26  ;;  %v6484_v3 = vcombine.high %v6453_v26, %v6453_v26  ;;  %v6488_v59 = vsel %vm5529_vm5, %v2225_v34, 0  ;;  %v2151_v12 = vshrl.u32 %v4535_v37, 16 }
 0x229   :  { %v6492_v55 = vsel %vm5529_vm5, %v2223_v8, 0  ;;  %v2037_v5 = vmax.f32 %v2021_v21, 0.0  ;;  %v2035_v31 = vmax.f32 %v2019_v18, 0.0  ;;  %v2038_v52 = vmax.f32 %v2022_v4, 0.0 }
 0x22a   :  { %7310 = vst [vmem:[#allocation20_spill] sm:$0xff] %v6492_v55  ;;  %v2226_v7 = vsel %vm5523_vm2, 0, %v2170_v47  ;;  %v2153_v41 = vrot.slane %v2151_v12, 7  ;;  %v2154_v35 = vshll.u32 %v4535_v37, 16  ;;  %v2020_v42 = vadd.f32 %v6370_v33, %v1972_v27 }
 0x22b   :  { %v6499_v6 = vcombine.low %v6488_v59, %v6488_v59  ;;  %v6503_v48 = vcombine.high %v6488_v59, %v6488_v59  ;;  %v4540_v15 = vpack.c.bf16 %v2037_v5, %v2037_v5  ;;  %v4538_v32 = vpack.c.bf16 %v2035_v31, %v2035_v31 }
 0x22c   :  { %v6507_v44 = vcombine.low %v6492_v55, %v6492_v55  ;;  %v2156_v61 = vor.u32 %v2154_v35, %v2153_v41  ;;  %v4541_v20 = vpack.c.bf16 %v2038_v52, %v2038_v52  ;;  %v2036_v9 = vmax.f32 %v2020_v42, 0.0 }
 0x22d   :  { %v6511_v33 = vsel %vm5529_vm5, %v2226_v7, 0  ;;  %v2186_v27 = vshrl.u32 %v4540_v15, 16  ;;  %v2172_v14 = vshrl.u32 %v4538_v32, 16  ;;  %v6515_v50 = vcombine.high %v6399_v60, %v6399_v60 }
 0x22e   :  { %v2224_v25 = vsel %vm5523_vm2, 0, %v2156_v61  ;;  %v2189_v45 = vshll.u32 %v4540_v15, 16  ;;  %v2193_v2 = vshrl.u32 %v4541_v20, 16  ;;  %v4539_v34 = vpack.c.bf16 %v2036_v9, %v2036_v9 }
 0x22f   :  { %v2188_v24 = vrot.slane %v2186_v27, 7  ;;  %v2174_v21 = vrot.slane %v2172_v14, 7  ;;  %v2175_v18 = vshll.u32 %v4538_v32, 16  ;;  %v2320_v8 = vshrl.u32 %v6420_v0, 16 }
 0x230   :  { %v6522_v37 = vcombine.high %v6492_v55, %v6492_v55  ;;  %v6526_v4 = vcombine.low %v6511_v33, %v6511_v33  ;;  %v2196_v47 = vshll.u32 %v4541_v20, 16  ;;  %v2179_v12 = vshrl.u32 %v4539_v34, 16 }
 0x231   :  { %v6530_v5 = vsel %vm5529_vm5, %v2224_v25, 0  ;;  %v2191_v31 = vor.u32 %v2189_v45, %v2188_v24  ;;  %v2177_v52 = vor.u32 %v2175_v18, %v2174_v21  ;;  %v2195_v7 = vrot.slane %v2193_v2, 7 }
 0x232   :  { %v2181_v41 = vrot.slane %v2179_v12, 7  ;;  %v2182_v35 = vshll.u32 %v4539_v34, 16  ;;  %v2322_v42 = vrot.slane %v2320_v8, 4  ;;  %v2323_v15 = vshll.u32 %v6420_v0, 16 }
 0x233   :  { %v2229_v32 = vsel %vm5523_vm2, 0, %v2191_v31  ;;  %v2227_v61 = vsel %vm5523_vm2, 0, %v2177_v52  ;;  %v2329_v20 = vshll.u32 %v6515_v50, 16  ;;  %v2334_v9 = vshrl.u32 %v6424_v16, 16 }
 0x234   :  { %v6541_v27 = vsel %vm5529_vm5, %v2229_v32, 0  ;;  %v6545_v14 = vsel %vm5529_vm5, %v2227_v61, 0  ;;  %v2184_v25 = vor.u32 %v2182_v35, %v2181_v41  ;;  %v2337_v45 = vshll.u32 %v6424_v16, 16 }
 0x235   :  { %v6550_v2 = vcombine.high %v6511_v33, %v6511_v33  ;;  %v6554_v34 = vcombine.low %v6530_v5, %v6530_v5  ;;  %v6558_v24 = vcombine.high %v6530_v5, %v6530_v5  ;;  %v4343_v21 = vcombine.high %v6411_v29, %v6411_v29 }
 0x236   :  { %v6564_v18 = vcombine.low %v6541_v27, %v6541_v27  ;;  %v6566_v8 = vor.u32 %v2196_v47, %v2195_v7  ;;  %v2228_v12 = vsel %vm5523_vm2, 0, %v2184_v25  ;;  %v2325_v31 = vrot.slane %v2323_v15, 5 }
 0x237   :  { %v6572_v52 = vcombine.high %v6541_v27, %v6541_v27  ;;  %v6576_v41 = vcombine.low %v6545_v14, %v6545_v14  ;;  %v6580_v35 = vcombine.high %v6545_v14, %v6545_v14  ;;  %v2336_v32 = vrot.slane %v2334_v9, 4 }
 0x238   :  { %v6584_v47 = vsel %vm5529_vm5, %v2228_v12, 0  ;;  %v2326_v7 = vor.u32 %v2325_v31, %v2322_v42  ;;  %v2331_v61 = vrot.slane %v2329_v20, 5  ;;  %v2339_v15 = vrot.slane %v2337_v45, 5 }
 0x239   :  { %v2343_v25 = vshll.u32 %v4343_v21, 16  ;;  %v2348_v11 = vshrl.u32 %v6392_v10, 16  ;;  %v2351_v39 = vshll.u32 %v6392_v10, 16  ;;  %v2357_v62 = vshll.u32 %v6407_v54, 16 }
 0x23a   :  { %v2327_v58 = vrot.slane %v2326_v7, 4  ;;  %v2340_v19 = vor.u32 %v2339_v15, %v2336_v32  ;;  %v2362_v26 = vshrl.u32 %v6429_v13, 16  ;;  %v2365_v9 = vshll.u32 %v6429_v13, 16 }
 0x23b   :  { %v6593_v12 = vcombine.low %v6584_v47, %v6584_v47  ;;  %v2345_v42 = vrot.slane %v2343_v25, 5  ;;  %v2350_v20 = vrot.slane %v2348_v11, 4  ;;  %v2353_v45 = vrot.slane %v2351_v39, 5 }
 0x23c   :  { %v6597_v31 = vsel %vm5613_vm8, %v2327_v58, %v2331_v61  ;;  %v2341_v53 = vrot.slane %v2340_v19, 4  ;;  %v2364_v55 = vrot.slane %v2362_v26, 4  ;;  %v2367_v63 = vrot.slane %v2365_v9, 5 }
 0x23d   :  { %7311 = vst [vmem:[#allocation22_spill] sm:$0xff] %v6597_v31  ;;  %v2354_v7 = vor.u32 %v2353_v45, %v2350_v20  ;;  %v2359_v32 = vrot.slane %v2357_v62, 5  ;;  %v2371_v15 = vshll.u32 %v6433_v43, 16  ;;  %v4368_v40 = vcombine.low %v7301_v57, %v6597_v31 }
 0x23e   :  { %v6604_v29 = vsel %vm5613_vm8, %v2341_v53, %v2345_v42  ;;  %v2368_v11 = vor.u32 %v2367_v63, %v2364_v55  ;;  %v2808_v39 = vrot.slane %v4343_v21, 5  ;;  %v2376_v25 = vshrl.u32 %v6472_v51, 16 }
 0x23f   :  { %7312 = vst [vmem:[#allocation14_spill] sm:$0xff] %v6604_v29  ;;  %v2355_v58 = vrot.slane %v2354_v7, 4  ;;  %v2373_v61 = vrot.slane %v2371_v15, 5  ;;  %4914 = vmatprep.mubr.msk.bf16.mxu1 %vm2545_vm13, %v4368_v40  ;;  %v2379_v62 = vshll.u32 %v6472_v51, 16  ;;  %v7313_v9 = vrot.slane %v6424_v16, 9  ;;  %v6640_v15 = vld [vmem:[%s7158_s3 + $0x10] sm:$0xff]  }
 0x240   :  { %v2369_v26 = vrot.slane %v2368_v11, 4  ;;  %v2378_v63 = vrot.slane %v2376_v25, 4  ;;  %v2385_v55 = vshll.u32 %v6476_v56, 16  ;;  %v2390_v42 = vshrl.u32 %v6480_v46, 16  ;;  %7317 = vst [vmem:[#allocation9_spill] sm:$0xff] %v6640_v15 }
 0x241   :  { %v6615_v53 = vsel %vm5650_vm12, %v7313_v9, %v2808_v39  ;;  %v6620_v21 = vsel %vm5613_vm8, %v2355_v58, %v2359_v32  ;;  %v2381_v40 = vrot.slane %v2379_v62, 5  ;;  %v2393_v20 = vshll.u32 %v6480_v46, 16 }
 0x242   :  { %7314 = vst [vmem:[#allocation26_spill] sm:$0xff] %v6620_v21  ;;  %v6626_v45 = vcombine.high %v6584_v47, %v6584_v47  ;;  %v6630_v16 = vsel %vm5613_vm8, %v2369_v26, %v2373_v61  ;;  %v6634_v7 = vcombine.low %v6604_v29, %v6620_v21  ;;  %v2399_v32 = vshll.u32 %v6484_v3, 16 }
 0x243   :  { %7315 = vst [vmem:[#allocation6_spill] sm:$0xff] %v6630_v16  ;;  %v2382_v39 = vor.u32 %v2381_v40, %v2378_v63  ;;  %v2392_v25 = vrot.slane %v2390_v42, 4  ;;  %v2395_v58 = vrot.slane %v2393_v20, 5  ;;  %v2387_v61 = vrot.slane %v2385_v55, 5 }
 0x244   :  { %7316 = vst [vmem:[#allocation8_spill] sm:$0xff] %v6634_v7  ;;  %4915 = vmatmul.mubr.msk.bf16.vlgmr.msra.gmra.mrb[0].mxu1 %vm2545_vm13, %v6634_v7  ;;  %v2404_v62 = vshrl.u32 %v6461_v17, 16  ;;  %v2407_v26 = vshll.u32 %v6461_v17, 16  ;;  %v2413_v9 = vshll.u32 %v6468_v38, 16  ;;  %v2418_v31 = vshrl.u32 %v6507_v44, 16 }
 0x245   :  { %4931 = vmatpush3.bf16.msra.mxu1 %v6364_v23  ;;  %v2383_v19 = vrot.slane %v2382_v39, 4  ;;  %v2396_v29 = vor.u32 %v2395_v58, %v2392_v25  ;;  %v2421_v63 = vshll.u32 %v6507_v44, 16  ;;  %v2401_v40 = vrot.slane %v2399_v32, 5 }
 0x246   :  { %v2406_v42 = vrot.slane %v2404_v62, 4  ;;  %v2409_v20 = vrot.slane %v2407_v26, 5  ;;  %v2427_v11 = vshll.u32 %v6522_v37, 16  ;;  %4948 = vmatprep.subr.bf16.mxu1 %v6640_v15  ;;  %v2420_v21 = vrot.slane %v2418_v31, 4 }
 0x247   :  { %v6656_v55 = vsel %vm5613_vm8, %v2383_v19, %v2387_v61  ;;  %v2397_v7 = vrot.slane %v2396_v29, 4  ;;  %v2423_v23 = vrot.slane %v2421_v63, 5  ;;  %v2415_v58 = vrot.slane %v2413_v9, 5 }
 0x248   :  { %7318 = vst [vmem:[#allocation10_spill] sm:$0xff] %v6656_v55  ;;  %v6660_v39 = vcombine.low %v6630_v16, %v6656_v55  ;;  %v2410_v25 = vor.u32 %v2409_v20, %v2406_v42  ;;  %v2432_v32 = vshrl.u32 %v6554_v34, 16  ;;  %v2435_v15 = vshll.u32 %v6554_v34, 16 }
 0x249   :  { %v6665_v62 = vsel %vm5613_vm8, %v2397_v7, %v2401_v40  ;;  %v2424_v26 = vor.u32 %v2423_v23, %v2420_v21  ;;  %v2441_v19 = vshll.u32 %v6558_v24, 16  ;;  %v2446_v61 = vshrl.u32 %v6499_v6, 16 }
 0x24a   :  { %7319 = vst [vmem:[#allocation12_spill] sm:$0xff] %v6660_v39  ;;  %4918 = vmatprep.mubr.msk.bf16.mxu1 %vm2545_vm13, %v6660_v39  ;;  %v2411_v29 = vrot.slane %v2410_v25, 4  ;;  %v2434_v31 = vrot.slane %v2432_v32, 4  ;;  %v2449_v9 = vshll.u32 %v6499_v6, 16  ;;  %v2429_v42 = vrot.slane %v2427_v11, 5 }
 0x24b   :  { %v2425_v63 = vrot.slane %v2424_v26, 4  ;;  %v2437_v20 = vrot.slane %v2435_v15, 5  ;;  %v2455_v7 = vshll.u32 %v6503_v48, 16  ;;  %v2448_v40 = vrot.slane %v2446_v61, 4 }
 0x24c   :  { %v6676_v21 = vsel %vm5613_vm8, %v2411_v29, %v2415_v58  ;;  %v2451_v23 = vrot.slane %v2449_v9, 5  ;;  %v2460_v16 = vshrl.u32 %v6526_v4, 16  ;;  %v2443_v15 = vrot.slane %v2441_v19, 5 }
 0x24d   :  { %7320 = vst [vmem:[#allocation18_spill] sm:$0xff] %v6676_v21  ;;  %v6681_v25 = vcombine.low %v6665_v62, %v6676_v21  ;;  %v6685_v32 = vsel %vm5613_vm8, %v2425_v63, %v2429_v42  ;;  %v2438_v11 = vor.u32 %v2437_v20, %v2434_v31  ;;  %v2463_v29 = vshll.u32 %v6526_v4, 16 }
 0x24e   :  { %v4372_v26 = vcombine.low %v7301_v57, %v6685_v32  ;;  %v2452_v39 = vor.u32 %v2451_v23, %v2448_v40  ;;  %v2462_v58 = vrot.slane %v2460_v16, 4  ;;  %v2457_v9 = vrot.slane %v2455_v7, 5 }
 0x24f   :  { %7321 = vst [vmem:[#allocation11_spill] sm:$0xff] %v6681_v25  ;;  %4919 = vmatmul.mubr.msk.bf16.gmra.mrb[4].mxu1 %vm2545_vm13, %v6681_v25  ;;  %v2439_v61 = vrot.slane %v2438_v11, 4  ;;  %v2474_v21 = vshrl.u32 %v6576_v41, 16  ;;  %v2477_v55 = vshll.u32 %v6576_v41, 16  ;;  %v2465_v19 = vrot.slane %v2463_v29, 5 }
 0x250   :  { %4922 = vmatprep.mubr.msk.bf16.mxu1 %vm2545_vm13, %v4372_v26  ;;  %v2453_v31 = vrot.slane %v2452_v39, 4  ;;  %v2469_v63 = vshll.u32 %v6550_v2, 16  ;;  %v2488_v42 = vshrl.u32 %v6593_v12, 16  ;;  %v2483_v7 = vshll.u32 %v6580_v35, 16 }
 0x251   :  { %v6699_v16 = vsel %vm5613_vm8, %v2439_v61, %v2443_v15  ;;  %v2476_v20 = vrot.slane %v2474_v21, 4  ;;  %v2479_v40 = vrot.slane %v2477_v55, 5  ;;  %v2230_v23 = vsel %vm5523_vm2, 0, %v6566_v8 }
 0x252   :  { %v6707_v39 = vsel %vm5613_vm8, %v2453_v31, %v2457_v9  ;;  %v2466_v11 = vor.u32 %v2465_v19, %v2462_v58  ;;  %v2490_v26 = vrot.slane %v2488_v42, 4  ;;  %v2491_v21 = vshll.u32 %v6593_v12, 16 }
 0x253   :  { %v6711_v29 = vcombine.low %v6699_v16, %v6707_v39  ;;  %v2480_v15 = vor.u32 %v2479_v40, %v2476_v20  ;;  %v2497_v55 = vshll.u32 %v6626_v45, 16  ;;  %v2502_v57 = vshrl.u32 %v6564_v18, 16 }
 0x254   :  { %v2467_v61 = vrot.slane %v2466_v11, 4  ;;  %v2505_v8 = vshll.u32 %v6564_v18, 16  ;;  %v2511_v25 = vshll.u32 %v6572_v52, 16  ;;  %v2471_v9 = vrot.slane %v2469_v63, 5 }
 0x255   :  { %7322 = vst [vmem:[#allocation16_spill] sm:$0xff] %v6711_v29  ;;  %v2481_v31 = vrot.slane %v2480_v15, 4  ;;  %v2485_v58 = vrot.slane %v2483_v7, 5  ;;  %v2493_v19 = vrot.slane %v2491_v21, 5  ;;  %v6720_v42 = vsel %vm5529_vm5, %v2230_v23, 0 }
 0x256   :  { %v2804_v20 = vrot.slane %v6515_v50, 5  ;;  %v2504_v40 = vrot.slane %v2502_v57, 4  ;;  %v2507_v22 = vrot.slane %v2505_v8, 5  ;;  %v6727_v11 = vsel %vm5613_vm8, %v2467_v61, %v2471_v9 }
 0x257   :  { %4923 = vmatmul.mubr.msk.bf16.gmra.mrb[8].mxu1 %vm2545_vm13, %v6711_v29  ;;  %v6731_v63 = vsel %vm5613_vm8, %v2481_v31, %v2485_v58  ;;  %v2494_v7 = vor.u32 %v2493_v19, %v2490_v26  ;;  %v2499_v15 = vrot.slane %v2497_v55, 5  ;;  %v2513_v57 = vrot.slane %v2511_v25, 5 }
 0x258   :  { %v6735_v23 = vcombine.low %v6727_v11, %v6731_v63  ;;  %v2508_v50 = vor.u32 %v2507_v22, %v2504_v40  ;;  %v6739_v21 = vcombine.low %v6530_v5, %v6488_v59  ;;  %v6743_v61 = vcombine.low %v6511_v33, %v6545_v14 }
 0x259   :  { %v2495_v8 = vrot.slane %v2494_v7, 4  ;;  %v6747_v9 = vcombine.low %v6584_v47, %v6541_v27  ;;  %v4402_v26 = vrot.slane %v6420_v0, 9  ;;  %v7324_v25 = vrot.slane %v6407_v54, 5 }
 0x25a   :  { %7323 = vst [vmem:[#allocation19_spill] sm:$0xff] %v6735_v23  ;;  %4926 = vmatprep.mubr.msk.bf16.mxu1 %vm2545_vm13, %v6735_v23  ;;  %v2509_v22 = vrot.slane %v2508_v50, 4  ;;  %v7325_v55 = vrot.slane %v6392_v10, 9  ;;  %v4405_v58 = vrot.slane %v6429_v13, 9  ;;  %v2816_v19 = vrot.slane %v6433_v43, 5 }
 0x25b   :  { %v6764_v40 = vsel %vm5613_vm8, %v2495_v8, %v2499_v15  ;;  %v6768_v0 = vsel %vm5650_vm12, %v4402_v26, %v2804_v20  ;;  %v4406_v10 = vrot.slane %v6472_v51, 9  ;;  %v4385_v13 = vcombine.low %v5535_v28, %v6399_v60  ;;  %v7339_v51 = vld [vmem:[#allocation21_spill] sm:$0xff] }
 0x25c   :  { %v6758_v31 = vsel %vm5650_vm12, %v7325_v55, %v7324_v25  ;;  %v6777_v7 = vsel %vm5613_vm8, %v2509_v22, %v2513_v57  ;;  %v6783_v43 = vsel %vm5650_vm12, %v4405_v58, %v2816_v19  ;;  %v2820_v20 = vrot.slane %v6476_v56, 5 }
 0x25d   :  { %v6772_v54 = vcombine.low %v6615_v53, %v6758_v31  ;;  %7326 = vst [vmem:[#allocation23_spill] sm:$0xff] %v6783_v43  ;;  %v6788_v15 = vcombine.low %v6764_v40, %v6777_v7  ;;  %v4407_v50 = vrot.slane %v6480_v46, 9  ;;  %v2824_v57 = vrot.slane %v6484_v3, 5 }
 0x25e   :  { %v6796_v8 = vsel %vm5650_vm12, %v4406_v10, %v2820_v20  ;;  %v4408_v26 = vrot.slane %v6461_v17, 9  ;;  %v2828_v22 = vrot.slane %v6468_v38, 5  ;;  %v4409_v56 = vrot.slane %v6507_v44, 9 }
 0x25f   :  { %7327 = vst [vmem:[#allocation28_spill] sm:$0xff] %v6788_v15  ;;  %4927 = vmatmul.mubr.msk.bf16.gmra.mrb[12].mxu1 %vm2545_vm13, %v6788_v15  ;;  %v6805_v25 = vcombine.low %v6783_v43, %v6796_v8  ;;  %v6809_v46 = vsel %vm5650_vm12, %v4407_v50, %v2824_v57  ;;  %v2832_v3 = vrot.slane %v6522_v37, 5  ;;  %v4410_v55 = vrot.slane %v6554_v34, 9 }
 0x260   :  { %7328 = vst [vmem:[#allocation29_spill] sm:$0xff] %v6809_v46  ;;  %4932 = vmatprep.mubr.msk.bf16.mxu1 %vm2545_vm13, %v4385_v13  ;;  %v6816_v17 = vsel %vm5650_vm12, %v4408_v26, %v2828_v22  ;;  %v2836_v38 = vrot.slane %v6558_v24, 5  ;;  %v4411_v44 = vrot.slane %v6499_v6, 9  ;;  %v2840_v58 = vrot.slane %v6503_v48, 5  ;;  %v7330_v13 = vld [vmem:[#allocation24_spill] sm:$0xff] }
 0x261   :  { %7329 = vst [vmem:[#allocation30_spill] sm:$0xff] %v6816_v17  ;;  %v6823_v19 = vcombine.low %v6809_v46, %v6816_v17  ;;  %v6827_v37 = vsel %vm5650_vm12, %v4409_v56, %v2832_v3  ;;  %v4412_v34 = vrot.slane %v6526_v4, 9  ;;  %v2844_v10 = vrot.slane %v6550_v2, 5 }
 0x262   :  { %v6833_v20 = vcombine.low %v7330_v13, %v6385_v30  ;;  %v6837_v6 = vsel %vm5650_vm12, %v4410_v55, %v2836_v38  ;;  %v6841_v48 = vsel %vm5650_vm12, %v4411_v44, %v2840_v58  ;;  %v4413_v24 = vrot.slane %v6576_v41, 9  ;;  %v7332_v55 = vld [vmem:[#allocation15_spill] sm:$0xff]  ;;  %v7333_v38 = vld [vmem:[#allocation13_spill] sm:$0xff] }
 0x263   :  { %v6846_v50 = vcombine.low %v6837_v6, %v6841_v48  ;;  %v6850_v4 = vsel %vm5650_vm12, %v4412_v34, %v2844_v10  ;;  %v2848_v2 = vrot.slane %v6580_v35, 5  ;;  %v4414_v57 = vrot.slane %v6593_v12, 9  ;;  %v5420_v35 = vld [vmem:[%s7158_s3 + $0x18] sm:$0xff]  }
 0x264   :  { %7331 = vst [vmem:[#allocation24_spill] sm:$0xff] %v6833_v20  ;;  %v4452_v26 = vcombine.low %v6720_v42, %v6720_v42  ;;  %v2852_v22 = vrot.slane %v6626_v45, 5  ;;  %v4415_v56 = vrot.slane %v6564_v18, 9  ;;  %v2856_v41 = vrot.slane %v6572_v52, 5  ;;  %v7335_v45 = vld [vmem:[#allocation20_spill] sm:$0xff] }
 0x265   :  { %v4453_v3 = vcombine.high %v6720_v42, %v6720_v42  ;;  %v6863_v44 = vcombine.low %v7333_v38, %v7332_v55  ;;  %v6870_v12 = vsel %vm5650_vm12, %v4413_v24, %v2848_v2  ;;  %v4477_v10 = vcombine.low %v6827_v37, %v6837_v6 }
 0x266   :  { %v6876_v52 = vcombine.low %v6850_v4, %v6870_v12  ;;  %v6880_v58 = vsel %vm5650_vm12, %v4414_v57, %v2852_v22  ;;  %v6884_v34 = vsel %vm5650_vm12, %v4415_v56, %v2856_v41  ;;  %v7336_v22 = vld [vmem:[#allocation10_spill] sm:$0xff]  ;;  %v7337_v41 = vld [vmem:[#allocation9_spill] sm:$0xff]  ;;  %v3203_v18 = vshrl.u32 %v4452_v26, 16 }
 0x267   :  { %7334 = vst [vmem:[#allocation15_spill] sm:$0xff] %v6863_v44  ;;  %4933 = vmatmul.mubr.msk.bf16.vlgmr.msra.gmra.mrb[0].mxu1 %vm2545_vm13, %v6833_v20  ;;  %v6892_v24 = vcombine.low %v6880_v58, %v6884_v34  ;;  %v3206_v57 = vshll.u32 %v4452_v26, 16  ;;  %v3212_v15 = vshll.u32 %v4453_v3, 16  ;;  %v4472_v29 = vrot.slane %v4452_v26, 9 }
 0x268   :  { %4936 = vmatprep.mubr.msk.bf16.mxu1 %vm2545_vm13, %v6863_v44  ;;  %4949 = vmatpush3.bf16.msra.mxu1 %v7337_v41  ;;  %v3205_v23 = vrot.slane %v3203_v18, 4  ;;  %v7338_v44 = vld [vmem:[#allocation17_spill] sm:$0xff]  ;;  %v3377_v43 = vrot.slane %v4453_v3, 5  ;;  %v4435_v18 = vcombine.low %v7332_v55, %v7339_v51  ;;  %v7344_v55 = vcombine.low %v6488_v59, %v6511_v33 }
 0x269   :  { %4966 = vmatprep.subr.bf16.mxu1 %v5420_v35  ;;  %v3208_v56 = vrot.slane %v3206_v57, 5  ;;  %v6915_v20 = vcombine.low %v7339_v51, %v7338_v44  ;;  %v4389_v57 = vcombine.low %v5535_v28, %v7335_v45  ;;  %v3214_v46 = vrot.slane %v3212_v15, 5  ;;  %v7340_v15 = vld [vmem:[#allocation27_spill] sm:$0xff] }
 0x26a   :  { %v7345_v2 = vcombine.low %v6545_v14, %v6584_v47  ;;  %v5423_v14 = vld [vmem:[%s7158_s3 + $0x30] sm:$0xff]   ;;  %v7358_v1 = vcombine.low %v6768_v0, %v6615_v53 }
 0x26b   :  { %v3209_v17 = vor.u32 %v3208_v56, %v3205_v23  ;;  %v6930_v23 = vsel %vm5650_vm12, %v4472_v29, %v3377_v43  ;;  %v4416_v29 = vcombine.low %v7340_v15, %v6768_v0  ;;  %v5421_v43 = vld [vmem:[%s7158_s3 + $0x20] sm:$0xff]   ;;  %v7363_v0 = vld [vmem:[#allocation30_spill] sm:$0xff] }
 0x26c   :  { %v7366_v49 = vcombine.low %v6884_v34, %v6930_v23 }
 0x26d   :  { %v3210_v41 = vrot.slane %v3209_v17, 4 }
 0x26e   :  { %v7368_v6 = vld [vmem:[#allocation15_spill] sm:$0xff] }
 0x26f   :  { %4937 = vmatmul.mubr.msk.bf16.gmra.mrb[4].mxu1 %vm2545_vm13, %v6915_v20  ;;  %v6934_v56 = vsel %vm5613_vm8, %v3210_v41, %v3214_v46  ;;  %v7341_v46 = vld [vmem:[#allocation25_spill] sm:$0xff] }
 0x270   :  { %4940 = vmatprep.mubr.msk.bf16.mxu1 %vm2545_vm13, %v4389_v57  ;;  %v4461_v26 = vcombine.low %v6777_v7, %v6934_v56  ;;  %v4420_v7 = vcombine.low %v7340_v15, %v6827_v37  ;;  %v2030_v17 = vmax.f32 %v7341_v46, 0.0  ;;  %v4434_v46 = vcombine.low %v6385_v30, %v7333_v38  ;;  %v5425_v37 = vld [vmem:[%s7158_s3 + $0x40] sm:$0xff]  }
 0x271   :  { %v7343_v38 = vcombine.low %v7335_v45, %v6530_v5  ;;  %v7346_v5 = vcombine.low %v6541_v27, %v6720_v42  ;;  %v7353_v27 = vcombine.low %v7336_v22, %v6665_v62  ;;  %v7356_v62 = vcombine.low %v6707_v39, %v6727_v11  ;;  %v7359_v11 = vld [vmem:[#allocation23_spill] sm:$0xff] }
 0x272   :  { %v4533_v3 = vpack.c.bf16 %v2030_v17, %v2030_v17  ;;  %v5422_v17 = vld [vmem:[%s7158_s3 + $0x28] sm:$0xff]   ;;  %v7357_v22 = vcombine.low %v6731_v63, %v6764_v40 }
 0x273   :  { %v7361_v63 = vld [vmem:[#allocation29_spill] sm:$0xff] }
 0x274   :  { %v2137_v41 = vshrl.u32 %v4533_v3, 16  ;;  %v7362_v40 = vcombine.low %v6796_v8, %v7361_v63  ;;  %v7365_v8 = vcombine.low %v6870_v12, %v6880_v58  ;;  %v7370_v12 = vld [vmem:[#allocation12_spill] sm:$0xff]  ;;  %v7371_v58 = vld [vmem:[#allocation11_spill] sm:$0xff] }
 0x276   :  { %v2139_v57 = vrot.slane %v2137_v41, 7  ;;  %v7348_v41 = vld [vmem:[#allocation14_spill] sm:$0xff] }
 0x277   :  { %4941 = vmatmul.mubr.msk.bf16.gmra.mrb[8].mxu1 %vm2545_vm13, %v6739_v21 }
 0x278   :  { %4944 = vmatprep.mubr.msk.bf16.mxu1 %vm2545_vm13, %v6743_v61 }
 0x27f   :  { %4945 = vmatmul.mubr.msk.bf16.gmra.mrb[12].mxu1 %vm2545_vm13, %v6747_v9 }
 0x280   :  { %4950 = vmatprep.mubr.msk.bf16.mxu1 %vm2545_vm13, %v4416_v29  ;;  %v2140_v29 = vshll.u32 %v4533_v3, 16  ;;  %v7347_v3 = vld [vmem:[#allocation22_spill] sm:$0xff] }
 0x281   :  { %v7349_v59 = vcombine.low %v7347_v3, %v7348_v41 }
 0x287   :  { %4951 = vmatmul.mubr.msk.bf16.vlgmr.msra.gmra.mrb[0].mxu1 %vm2545_vm13, %v6772_v54 }
 0x288   :  { %4954 = vmatprep.mubr.msk.bf16.mxu1 %vm2545_vm13, %v6805_v25  ;;  %4967 = vmatpush3.bf16.msra.mxu1 %v5420_v35  ;;  %v4433_v35 = vcombine.low %v6399_v60, %v7330_v13 }
 0x289   :  { %4984 = vmatprep.subr.bf16.mxu1 %v5421_v43 }
 0x28f   :  { %4955 = vmatmul.mubr.msk.bf16.gmra.mrb[4].mxu1 %vm2545_vm13, %v6823_v19 }
 0x290   :  { %4958 = vmatprep.mubr.msk.bf16.mxu1 %vm2545_vm13, %v4420_v7  ;;  %v2142_v7 = vor.u32 %v2140_v29, %v2139_v57  ;;  %v7350_v57 = vld [vmem:[#allocation26_spill] sm:$0xff] }
 0x291   :  { %v7351_v29 = vld [vmem:[#allocation6_spill] sm:$0xff] }
 0x292   :  { %v2222_v60 = vsel %vm5523_vm2, 0, %v2142_v7  ;;  %v7352_v7 = vcombine.low %v7350_v57, %v7351_v29 }
 0x293   :  { %v2238_v13 = vsel %vm5529_vm5, %v2222_v60, 0 }
 0x294   :  { %v4436_v30 = vcombine.low %v7338_v44, %v2238_v13  ;;  %v4450_v51 = vcombine.low %v2238_v13, %v2238_v13  ;;  %v4451_v45 = vcombine.high %v2238_v13, %v2238_v13 }
 0x296   :  { %v3189_v36 = vshrl.u32 %v4450_v51, 16  ;;  %v3192_v44 = vshll.u32 %v4450_v51, 16  ;;  %v3373_v39 = vrot.slane %v4451_v45, 5 }
 0x297   :  { %4959 = vmatmul.mubr.msk.bf16.gmra.mrb[8].mxu1 %vm2545_vm13, %v6846_v50 }
 0x298   :  { %4962 = vmatprep.mubr.msk.bf16.mxu1 %vm2545_vm13, %v6876_v52 }
 0x29f   :  { %4963 = vmatmul.mubr.msk.bf16.gmra.mrb[12].mxu1 %vm2545_vm13, %v6892_v24 }
 0x2a0   :  { %4968 = vmatprep.mubr.msk.bf16.mxu1 %vm2545_vm13, %v4433_v35  ;;  %v3198_v35 = vshll.u32 %v4451_v45, 16 }
 0x2a7   :  { %4969 = vmatmul.mubr.msk.bf16.vlgmr.msra.gmra.mrb[0].mxu1 %vm2545_vm13, %v4434_v46  ;;  %v3200_v46 = vrot.slane %v3198_v35, 5 }
 0x2a8   :  { %4972 = vmatprep.mubr.msk.bf16.mxu1 %vm2545_vm13, %v4435_v18  ;;  %4985 = vmatpush3.bf16.msra.mxu1 %v5421_v43  ;;  %v3191_v18 = vrot.slane %v3189_v36, 4  ;;  %v3194_v43 = vrot.slane %v3192_v44, 5 }
 0x2a9   :  { %5002 = vmatprep.subr.bf16.mxu1 %v5422_v17 }
 0x2aa   :  { %v3195_v33 = vor.u32 %v3194_v43, %v3191_v18 }
 0x2ac   :  { %v3196_v47 = vrot.slane %v3195_v33, 4 }
 0x2ae   :  { %v3201_v60 = vsel %vm5613_vm8, %v3196_v47, %v3200_v46 }
 0x2af   :  { %4973 = vmatmul.mubr.msk.bf16.gmra.mrb[4].mxu1 %vm2545_vm13, %v4436_v30  ;;  %v7354_v30 = vld [vmem:[#allocation18_spill] sm:$0xff] }
 0x2b0   :  { %4976 = vmatprep.mubr.msk.bf16.mxu1 %vm2545_vm13, %v7343_v38  ;;  %v4457_v38 = vcombine.low %v7354_v30, %v3201_v60 }
 0x2b7   :  { %4977 = vmatmul.mubr.msk.bf16.gmra.mrb[8].mxu1 %vm2545_vm13, %v7344_v55  ;;  %v7355_v55 = vcombine.low %v6685_v32, %v6699_v16  ;;  %v5424_v32 = vld [vmem:[%s7158_s3 + $0x38] sm:$0xff]   ;;  %v4471_v16 = vrot.slane %v4450_v51, 9 }
 0x2b8   :  { %4980 = vmatprep.mubr.msk.bf16.mxu1 %vm2545_vm13, %v7345_v2  ;;  %v7367_v51 = vld [vmem:[#allocation24_spill] sm:$0xff] }
 0x2b9   :  { %v3374_v53 = vsel %vm5650_vm12, %v4471_v16, %v3373_v39 }
 0x2bf   :  { %4981 = vmatmul.mubr.msk.bf16.gmra.mrb[12].mxu1 %vm2545_vm13, %v7346_v5 }
 0x2c0   :  { %4986 = vmatprep.mubr.msk.bf16.mxu1 %vm2545_vm13, %v7349_v59 }
 0x2c7   :  { %4987 = vmatmul.mubr.msk.bf16.vlgmr.msra.gmra.mrb[0].mxu1 %vm2545_vm13, %v7352_v7 }
 0x2c8   :  { %4990 = vmatprep.mubr.msk.bf16.mxu1 %vm2545_vm13, %v7353_v27  ;;  %5003 = vmatpush3.bf16.msra.mxu1 %v5422_v17  ;;  %v7360_v17 = vcombine.low %v6758_v31, %v7359_v11  ;;  %v7364_v31 = vcombine.low %v6841_v48, %v6850_v4  ;;  %v4490_v48 = vcombine.low %v2238_v13, %v5535_v28 }
 0x2c9   :  { %5020 = vmatprep.subr.bf16.mxu1 %v5423_v14  ;;  %v4491_v4 = vcombine.low %v6720_v42, %v5535_v28  ;;  %v7374_v28 = vld [vmem:[#allocation19_spill] sm:$0xff]  ;;  %v7375_v42 = vld [vmem:[#allocation28_spill] sm:$0xff] }
 0x2cf   :  { %4991 = vmatmul.mubr.msk.bf16.gmra.mrb[4].mxu1 %vm2545_vm13, %v4457_v38 }
 0x2d0   :  { %4994 = vmatprep.mubr.msk.bf16.mxu1 %vm2545_vm13, %v7355_v55 }
 0x2d7   :  { %4995 = vmatmul.mubr.msk.bf16.gmra.mrb[8].mxu1 %vm2545_vm13, %v7356_v62 }
 0x2d8   :  { %4998 = vmatprep.mubr.msk.bf16.mxu1 %vm2545_vm13, %v7357_v22 }
 0x2df   :  { %4999 = vmatmul.mubr.msk.bf16.gmra.mrb[12].mxu1 %vm2545_vm13, %v4461_v26  ;;  %v4476_v26 = vcombine.low %v7363_v0, %v3374_v53 }
 0x2e0   :  { %5004 = vmatprep.mubr.msk.bf16.mxu1 %vm2545_vm13, %v7358_v1 }
 0x2e7   :  { %5005 = vmatmul.mubr.msk.bf16.vlgmr.msra.gmra.mrb[0].mxu1 %vm2545_vm13, %v7360_v17 }
 0x2e8   :  { %5008 = vmatprep.mubr.msk.bf16.mxu1 %vm2545_vm13, %v7362_v40  ;;  %5021 = vmatpush3.bf16.msra.mxu1 %v5423_v14 }
 0x2e9   :  { %5038 = vmatprep.subr.bf16.mxu1 %v5424_v32 }
 0x2ef   :  { %5009 = vmatmul.mubr.msk.bf16.gmra.mrb[4].mxu1 %vm2545_vm13, %v4476_v26 }
 0x2f0   :  { %5012 = vmatprep.mubr.msk.bf16.mxu1 %vm2545_vm13, %v4477_v10  ;;  %v4512_v10 = vcombine.low %v3374_v53, %v7340_v15 }
 0x2f7   :  { %5013 = vmatmul.mubr.msk.bf16.gmra.mrb[8].mxu1 %vm2545_vm13, %v7364_v31 }
 0x2f8   :  { %5016 = vmatprep.mubr.msk.bf16.mxu1 %vm2545_vm13, %v7365_v8 }
 0x2ff   :  { %5017 = vmatmul.mubr.msk.bf16.gmra.mrb[12].mxu1 %vm2545_vm13, %v7366_v49 }
 0x300   :  { %5022 = vmatprep.mubr.msk.bf16.mxu1 %vm2545_vm13, %v7367_v51 }
 0x307   :  { %5023 = vmatmul.mubr.msk.bf16.vlgmr.msra.gmra.mrb[0].mxu1 %vm2545_vm13, %v7368_v6 }
 0x308   :  { %5026 = vmatprep.mubr.msk.bf16.mxu1 %vm2545_vm13, %v6915_v20  ;;  %5039 = vmatpush3.bf16.msra.mxu1 %v5424_v32  ;;  %v7369_v20 = vld [vmem:[#allocation8_spill] sm:$0xff] }
 0x309   :  { %5056 = vmatprep.subr.bf16.mxu1 %v5425_v37 }
 0x30f   :  { %5027 = vmatmul.mubr.msk.bf16.gmra.mrb[4].mxu1 %vm2545_vm13, %v4490_v48 }
 0x310   :  { %5030 = vmatprep.mubr.msk.bf16.mxu1 %vm2545_vm13, %v6739_v21  ;;  %v7372_v21 = vld [vmem:[#allocation7_spill] sm:$0xff] }
 0x311   :  { %v4502_v34 = vcombine.low %v6934_v56, %v7372_v21 }
 0x317   :  { %5031 = vmatmul.mubr.msk.bf16.gmra.mrb[8].mxu1 %vm2545_vm13, %v6743_v61  ;;  %v4501_v61 = vcombine.low %v3201_v60, %v7372_v21 }
 0x318   :  { %5034 = vmatprep.mubr.msk.bf16.mxu1 %vm2545_vm13, %v6747_v9  ;;  %v7373_v9 = vld [vmem:[#allocation16_spill] sm:$0xff] }
 0x31f   :  { %5035 = vmatmul.mubr.msk.bf16.gmra.mrb[12].mxu1 %vm2545_vm13, %v4491_v4 }
 0x320   :  { %5040 = vmatprep.mubr.msk.bf16.mxu1 %vm2545_vm13, %v7369_v20 }
 0x327   :  { %5041 = vmatmul.mubr.msk.bf16.vlgmr.msra.gmra.mrb[0].mxu1 %vm2545_vm13, %v7370_v12 }
 0x328   :  { %5044 = vmatprep.mubr.msk.bf16.mxu1 %vm2545_vm13, %v7371_v58  ;;  %5057 = vmatpush3.bf16.msra.mxu1 %v5425_v37 }
 0x32f   :  { %5045 = vmatmul.mubr.msk.bf16.gmra.mrb[4].mxu1 %vm2545_vm13, %v4501_v61 }
 0x330   :  { %5048 = vmatprep.mubr.msk.bf16.mxu1 %vm2545_vm13, %v7373_v9 }
 0x337   :  { %5049 = vmatmul.mubr.msk.bf16.gmra.mrb[8].mxu1 %vm2545_vm13, %v7374_v28 }
 0x338   :  { %5052 = vmatprep.mubr.msk.bf16.mxu1 %vm2545_vm13, %v7375_v42  ;;  %v3960_v42 = vld [vmem:[%s7162_s7] sm:$0x3] }
 0x33f   :  { %5053 = vmatmul.mubr.msk.bf16.gmra.mrb[12].mxu1 %vm2545_vm13, %v4502_v34 }
 0x340   :  { %5058 = vmatprep.mubr.msk.bf16.mxu1 %vm2545_vm13, %v6772_v54  ;;  %v4513_v54 = vcombine.low %v6930_v23, %v7340_v15 }
 0x347   :  { %5059 = vmatmul.mubr.msk.bf16.vlgmr.msra.gmra.mrb[0].mxu1 %vm2545_vm13, %v6805_v25  ;;  %v5451_v25 = vmov 0.0|0.0  }
 0x348   :  { %5062 = vmatprep.mubr.msk.bf16.mxu1 %vm2545_vm13, %v6823_v19  ;;  %5114 = vmatprep.subr.bf16.mxu1 %v5451_v25  ;;  %v5453_v19 = vmov 0.0  }
 0x349   :  { %5109 = vmatprep.subr.mxu0 %v5453_v19  ;;  %5111 = vmatprep.mubr.msk.f32.mxu0 %vm5452_vm14, %v5453_v19 }
 0x34f   :  { %5063 = vmatmul.mubr.msk.bf16.gmra.mrb[4].mxu1 %vm2545_vm13, %v4512_v10 }
 0x350   :  { %5066 = vmatprep.mubr.msk.bf16.mxu1 %vm2545_vm13, %v6846_v50  ;;  %v4031_v50 = vld [vmem:[%s7160_s5] sm:$0xff] }
 0x351   :  { %5110 = vmatpush3.msra.mxu0 %v4031_v50 }
 0x357   :  { %5067 = vmatmul.mubr.msk.bf16.gmra.mrb[8].mxu1 %vm2545_vm13, %v6876_v52  ;;  %v4523_v52 = vld [vmem:[%s7159_s4] ss:$0 sm:$0xff] }
 0x358   :  { %5070 = vmatprep.mubr.msk.bf16.mxu1 %vm2545_vm13, %v6892_v24 }
 0x35f   :  { %5071 = vmatmul.mubr.msk.bf16.gmra.mrb[12].mxu1 %vm2545_vm13, %v4513_v54  ;;  %v4524_v54 = vld [vmem:[%s7161_s6] ss:$0 sm:$0xff] }
 0x360   :  { %5106 = vmatprep.mubr.msk.f32.mxu1 %vm5452_vm14, %v5453_v19 }
 0x41a   :  { %v5060_v24 = vpop.f32.mrb[0].mxu1 }
 0x41b   :  { %v3930_v23 = vadd.f32 %v5060_v24, %v4523_v52  ;;  %v3842_v56 = vpop.f32.mrb[1].mxu1 }
 0x41c   :  { %v3928_v15 = vadd.f32 %v4523_v52, %v3842_v56  ;;  %v5061_v13 = vpop.f32.mrb[2].mxu1 }
 0x41d   :  { %v3931_v2 = vadd.f32 %v5061_v13, %v4523_v52  ;;  %v3845_v36 = vpop.f32.mrb[3].mxu1  ;;  %v3946_v18 = vmax.f32 %v3930_v23, 0.0 }
 0x41e   :  { %v3929_v44 = vadd.f32 %v4523_v52, %v3845_v36  ;;  %v3944_v5 = vmax.f32 %v3928_v15, 0.0 }
 0x41f   :  { %v3947_v43 = vmax.f32 %v3931_v2, 0.0 }
 0x420   :  { %v3945_v45 = vmax.f32 %v3929_v44, 0.0 }
 0x421   :  { %v5118_v3 = vpack.c.bf16 %v3947_v43, %v3946_v18 }
 0x422   :  { %v5115_v41 = vpack.c.bf16 %v3945_v45, %v3944_v5  ;;  %v5064_v59 = vpop.f32.mrb[4].mxu1 }
 0x423   :  { %v3934_v33 = vadd.f32 %v5064_v59, %v4523_v52  ;;  %v3858_v35 = vpop.f32.mrb[5].mxu1 }
 0x424   :  { %v3932_v14 = vadd.f32 %v4523_v52, %v3858_v35  ;;  %v5065_v47 = vpop.f32.mrb[6].mxu1  ;;  %5116 = vmatpush3.bf16.msra.mxu1 %v5115_v41 }
 0x425   :  { %v3935_v57 = vadd.f32 %v5065_v47, %v4523_v52  ;;  %v3861_v29 = vpop.f32.mrb[7].mxu1  ;;  %5117 = vmatprep.subr.bf16.mxu1 %v5451_v25  ;;  %v3950_v27 = vmax.f32 %v3934_v33, 0.0 }
 0x426   :  { %v3933_v7 = vadd.f32 %v4523_v52, %v3861_v29  ;;  %v3948_v60 = vmax.f32 %v3932_v14, 0.0 }
 0x427   :  { %v3951_v46 = vmax.f32 %v3935_v57, 0.0 }
 0x428   :  { %v3949_v30 = vmax.f32 %v3933_v7, 0.0  ;;  %5119 = vmatpush3.bf16.msra.mxu1 %v5118_v3 }
 0x429   :  { %v5124_v38 = vpack.c.bf16 %v3951_v46, %v3950_v27  ;;  %5120 = vmatprep.subr.bf16.mxu1 %v5451_v25 }
 0x42a   :  { %v5121_v55 = vpack.c.bf16 %v3949_v30, %v3948_v60  ;;  %v5068_v62 = vpop.f32.mrb[8].mxu1 }
 0x42b   :  { %v3938_v22 = vadd.f32 %v5068_v62, %v4523_v52  ;;  %v3874_v1 = vpop.f32.mrb[9].mxu1 }
 0x42c   :  { %v3936_v32 = vadd.f32 %v4523_v52, %v3874_v1  ;;  %v5069_v16 = vpop.f32.mrb[10].mxu1  ;;  %5122 = vmatpush3.bf16.msra.mxu1 %v5121_v55 }
 0x42d   :  { %v3939_v39 = vadd.f32 %v5069_v16, %v4523_v52  ;;  %v3877_v11 = vpop.f32.mrb[11].mxu1  ;;  %5123 = vmatprep.subr.bf16.mxu1 %v5451_v25  ;;  %v3954_v63 = vmax.f32 %v3938_v22, 0.0 }
 0x42e   :  { %v3937_v17 = vadd.f32 %v4523_v52, %v3877_v11  ;;  %v3952_v53 = vmax.f32 %v3936_v32, 0.0 }
 0x42f   :  { %v3955_v40 = vmax.f32 %v3939_v39, 0.0 }
 0x430   :  { %v3953_v0 = vmax.f32 %v3937_v17, 0.0  ;;  %5125 = vmatpush3.bf16.msra.mxu1 %v5124_v38 }
 0x431   :  { %v5130_v26 = vpack.c.bf16 %v3955_v40, %v3954_v63  ;;  %5126 = vmatprep.subr.bf16.mxu1 %v5451_v25 }
 0x432   :  { %v5127_v31 = vpack.c.bf16 %v3953_v0, %v3952_v53  ;;  %v5072_v8 = vpop.f32.mrb[12].mxu1 }
 0x433   :  { %v3942_v49 = vadd.f32 %v5072_v8, %v4523_v52  ;;  %v3890_v51 = vpop.f32.mrb[13].mxu1 }
 0x434   :  { %v3940_v37 = vadd.f32 %v4523_v52, %v3890_v51  ;;  %v5073_v6 = vpop.f32.mrb[14].mxu1  ;;  %5128 = vmatpush3.bf16.msra.mxu1 %v5127_v31 }
 0x435   :  { %v3943_v48 = vadd.f32 %v5073_v6, %v4523_v52  ;;  %v3893_v4 = vpop.f32.mrb[15].mxu1  ;;  %5129 = vmatprep.subr.bf16.mxu1 %v5451_v25  ;;  %v3958_v12 = vmax.f32 %v3942_v49, 0.0 }
 0x436   :  { %v3941_v20 = vadd.f32 %v4523_v52, %v3893_v4  ;;  %v3956_v21 = vmax.f32 %v3940_v37, 0.0 }
 0x437   :  { %v3959_v58 = vmax.f32 %v3943_v48, 0.0 }
 0x438   :  { %v3957_v61 = vmax.f32 %v3941_v20, 0.0  ;;  %5131 = vmatpush3.bf16.msra.mxu1 %v5130_v26 }
 0x439   :  { %v5136_v9 = vpack.c.bf16 %v3959_v58, %v3958_v12  ;;  %5132 = vmatprep.subr.bf16.mxu1 %v5451_v25 }
 0x43a   :  { %v5133_v28 = vpack.c.bf16 %v3957_v61, %v3956_v21 }
 0x43c   :  { %5134 = vmatpush3.bf16.msra.mxu1 %v5133_v28 }
 0x43d   :  { %5135 = vmatprep.subr.bf16.mxu1 %v5451_v25 }
 0x440   :  { %5137 = vmatpush3.bf16.msra.mxu1 %v5136_v9 }
 0x443   :  { %5107 = vmatmul.mubr.f32.vlgmr.msra.gmra.mrb[16].mxu1 %v3960_v42 }
 0x516   :  { %v4027_v34 = vpop.f32.mrb[16].mxu1 }
 0x517   :  { %v5108_v10 = vpop.f32.mrb[17].mxu1  ;;  %5112 = vmatmul.mubr.msk.f32.vlgmr.msra.gmra.mrb[16].mxu0 %vm4039_vm15, %v4027_v34 }
 0x5ea   :  { %v4109_v19 = vpop.f32.mrb[16].mxu0 }
 0x5eb   :  { %v4110_v50 = vadd.f32 %v4524_v54, %v4109_v19  ;;  %v5113_v52 = vpop.f32.mrb[17].mxu0 }
 0x5ed   :  { %4113 = vst [vmem:[#allocation2] sm:$0x3] %v4110_v50 }
 0x5ee   :  { %5437 = shalt.err (!%p5434_p4)
}
 0x5ef   :  { %s5438_s9 = scalar_lea.hbm %s7163_s8, 32 }
 0x5f0   :  { %p5439_p5 = scmp.ne.s32.totalorder %s7163_s8, %s5438_s9  ;;  %p5442_p6 = scmp.lt.u32.totalorder %s5438_s9, %s7163_s8 }
 0x5f2   :  { %p5444_p7 = pnand %p5442_p6, %p5439_p5 }
 0x5f4   :  { %5447 = shalt.err (!%p5444_p7)
}
 0x5f5   :  { %4123 = dma.vmem_to_hbm [thread:$0]  %s4121_s28, 32, %s7163_s8, [#allocation3]  }
 0x5f6   :  { %5448 = dma.done.wait [#allocation3], 32  }
 0x5f7   :  { %5449 = vsyncadd [#allocation3], 4294967264 }
 0x5f8   :  { %4127 = vsyncpa [#allocation3], 1 }

</bundles_post_ra>
